<compile_context>
chip_gen: v5e
topology: v5e:2x2
jax: 0.10.0
libtpu: 0.0.40
codegen_flags: <defaults>
</compile_context>

<pallas_src>
import functools

import jax
import jax.numpy as jnp
from jax import lax
from jax.experimental import pallas as pl
from jax.experimental.pallas import tpu as pltpu

BN_EPS = 1e-5
DILS = (7, 5, 3, 1)   # branch1, branch2_f, branch3_f, branch4_f


# --------------------------------------------------------------------------
# Fused Pallas kernel (one grid step == one batch element)
# --------------------------------------------------------------------------
def _shift_mat(H, d):
    """(H,H) 0/1 matrix S with S[h, h-d] = 1, so (S @ y)[h] = y[h-d]
    (rows falling outside [0,H) contribute zero -> the H-direction padding)."""
    r = lax.broadcasted_iota(jnp.int32, (H, H), 0)
    c = lax.broadcasted_iota(jnp.int32, (H, H), 1)
    return (c == r - d).astype(jnp.float32)


def _tffm_kernel(x1_ref, x2_ref, wx_ref, bq_ref, c1_ref,
                 w2_ref, c2_ref, w3_ref, c3_ref, w4_ref, c4_ref,
                 o_ref, *, H, WCin, WCo, dils):
    # x1/x2: (H, W*Cin) lane-dense activation slabs
    x = jnp.abs(x1_ref[...] - x2_ref[...])

    # One matmul for everything that consumes x:
    # columns = [1x1 branch2 | branch3 | branch4 | branch5 | conv1 taps 0,1,2]
    Q = 3 * WCin + WCo
    r = jnp.dot(x, wx_ref[...], preferred_element_type=jnp.float32)
    q = r[:, :Q] + bq_ref[...]
    q2 = q[:, 0 * WCin:1 * WCin]
    q3 = q[:, 1 * WCin:2 * WCin]
    q4 = q[:, 2 * WCin:3 * WCin]
    q5 = q[:, 3 * WCin:]

    def conv_tail(prod, bias_ref, d, wco):
        # prod = [act@T0 | act@T1 | act@T2]; kh=0/2 halves get shifted in H.
        y0 = prod[:, 0 * wco:1 * wco]
        y1 = prod[:, 1 * wco:2 * wco]
        y2 = prod[:, 2 * wco:3 * wco]
        top = jnp.dot(_shift_mat(H, d), y0, preferred_element_type=jnp.float32)
        bot = jnp.dot(_shift_mat(H, -d), y2, preferred_element_type=jnp.float32)
        return y1 + top + bot + bias_ref[...]

    def dconv(act, w_ref, bias_ref, d, wco):
        prod = jnp.dot(act, w_ref[...], preferred_element_type=jnp.float32)
        return conv_tail(prod, bias_ref, d, wco)

    b1 = conv_tail(r[:, Q:], c1_ref, dils[0], WCin)     # conv_branch1 (+BN)
    p2 = jnp.maximum(q2 + b1, 0.0)                      # relu(1x1(x) + b1)
    b2 = dconv(p2, w2_ref, c2_ref, dils[1], WCin)       # conv_branch2_f (+BN)
    p3 = jnp.maximum(q3 + b2, 0.0)
    b3 = dconv(p3, w3_ref, c3_ref, dils[2], WCin)       # conv_branch3_f (+BN)
    p4 = jnp.maximum(q4 + b3, 0.0)
    b4 = dconv(p4, w4_ref, c4_ref, dils[3], WCo)        # conv_branch4_f (+BN)
    o_ref[...] = jnp.maximum(q5 + b4, 0.0).astype(o_ref.dtype)


# --------------------------------------------------------------------------
# Wrapper-side weight re-layout (layout plumbing, done once outside the jit)
# --------------------------------------------------------------------------
def _block_diag_1x1(w, W):
    """(Cin, Cout) 1x1 conv weight -> (W*Cin, W*Cout) block-diagonal matrix."""
    return jnp.kron(jnp.eye(W, dtype=w.dtype), w)


def _row_toeplitz_3x3(w_hwio, dil, W):
    """(3,3,Cin,Cout) HWIO 3x3 conv weight -> (3, W*Cin, W*Cout).

    T[kh][(w + (kw-1)*dil)*Cin + ci, w*Cout + co] = w[kh, kw, ci, co]
    (source columns outside [0, W) are dropped == W-direction zero padding).
    """
    taps = []
    for kh in range(3):
        t = None
        for kw in range(3):
            shift = jnp.eye(W, k=-(kw - 1) * dil, dtype=w_hwio.dtype)
            piece = jnp.kron(shift, w_hwio[kh, kw])
            t = piece if t is None else t + piece
        taps.append(t)
    return jnp.stack(taps)


def fold_bn(w, b, bn_params):
    gamma, beta, mean, var = bn_params
    scale = gamma / jnp.sqrt(var + BN_EPS)
    w_eff = w * scale[None, None, None, :]
    b_eff = b * scale + (beta - mean * scale)
    return w_eff, b_eff


def build_fused_params(raw, W):
    """Fold BN + build the merged block-diagonal / row-Toeplitz weight slabs."""
    fp = {}
    taps = {}
    for idx, d in zip((1, 2, 3, 4), DILS):
        wf, bf = fold_bn(raw[f"w{idx}"], raw[f"cb{idx}"], raw[f"bn{idx}"])
        t = _row_toeplitz_3x3(wf, d, W)                         # (3, WCi, WCo)
        taps[idx] = jnp.concatenate([t[0], t[1], t[2]], axis=1)  # (WCi, 3*WCo)
        fp[f"c{idx}"] = jnp.tile(bf, W)[None, :]
    # everything applied to x = |x1-x2|: 1x1 branches 2..5 + conv1 taps
    fp["wx"] = jnp.concatenate(
        [_block_diag_1x1(raw["w2p"], W), _block_diag_1x1(raw["w3p"], W),
         _block_diag_1x1(raw["w4p"], W), _block_diag_1x1(raw["w5p"], W),
         taps[1]], axis=1)
    fp["bq"] = jnp.concatenate(
        [jnp.tile(raw["b2p"], W), jnp.tile(raw["b3p"], W),
         jnp.tile(raw["b4p"], W), jnp.tile(raw["b5p"], W)])[None, :]
    fp["w2"], fp["w3"], fp["w4"] = taps[2], taps[3], taps[4]
    return fp


# --------------------------------------------------------------------------
# Fused forward pass
# --------------------------------------------------------------------------
def tffm_forward(fp, x1_nchw, x2_nchw):
    N, Cin, H, W = x1_nchw.shape
    WCin = W * Cin
    WCo = fp["c4"].shape[-1]
    Cout = WCo // W

    # NCHW -> (N, H, W*C) lane-dense slabs (wrapper-side layout plumbing)
    x1 = jnp.transpose(x1_nchw, (0, 2, 3, 1)).reshape(N, H, WCin)
    x2 = jnp.transpose(x2_nchw, (0, 2, 3, 1)).reshape(N, H, WCin)

    kern = functools.partial(_tffm_kernel, H=H, WCin=WCin, WCo=WCo, dils=DILS)

    act_spec = pl.BlockSpec((None, H, WCin), lambda n: (n, 0, 0))
    out_spec = pl.BlockSpec((None, H, WCo), lambda n: (n, 0, 0))

    def full2(a):
        return pl.BlockSpec(a.shape, lambda n: (0, 0))

    out_flat = pl.pallas_call(
        kern,
        out_shape=jax.ShapeDtypeStruct((N, H, WCo), jnp.float32),
        grid=(N,),
        in_specs=[act_spec, act_spec,
                  full2(fp["wx"]), full2(fp["bq"]), full2(fp["c1"]),
                  full2(fp["w2"]), full2(fp["c2"]),
                  full2(fp["w3"]), full2(fp["c3"]),
                  full2(fp["w4"]), full2(fp["c4"])],
        out_specs=out_spec,
        compiler_params=pltpu.CompilerParams(
            dimension_semantics=("parallel",)),
    )(x1, x2, fp["wx"], fp["bq"], fp["c1"],
      fp["w2"], fp["c2"], fp["w3"], fp["c3"], fp["w4"], fp["c4"])

    out = out_flat.reshape(N, H, W, Cout)
    return jnp.transpose(out, (0, 3, 1, 2))            # -> NCHW


# --------------------------------------------------------------------------
# Parameter construction (deterministic, synthetic)
# --------------------------------------------------------------------------
def init_raw_params(key, in_d, out_d):
    ks = iter(jax.random.split(key, 40))

    def conv_w(ci, co, k=3):
        return jax.random.normal(next(ks), (k, k, ci, co), jnp.float32) * 0.1

    def vec(c, scale=0.1):
        return jax.random.normal(next(ks), (c,), jnp.float32) * scale

    def bn(c):
        gamma = 1.0 + vec(c)
        beta = vec(c)
        mean = vec(c)
        var = jnp.abs(jax.random.normal(next(ks), (c,), jnp.float32)) * 0.5 + 0.5
        return (gamma, beta, mean, var)

    raw = {}
    raw["w1"], raw["cb1"], raw["bn1"] = conv_w(in_d, in_d), vec(in_d), bn(in_d)
    raw["w2p"] = jax.random.normal(next(ks), (in_d, in_d), jnp.float32) * 0.1
    raw["b2p"] = vec(in_d)
    raw["w2"], raw["cb2"], raw["bn2"] = conv_w(in_d, in_d), vec(in_d), bn(in_d)
    raw["w3p"] = jax.random.normal(next(ks), (in_d, in_d), jnp.float32) * 0.1
    raw["b3p"] = vec(in_d)
    raw["w3"], raw["cb3"], raw["bn3"] = conv_w(in_d, in_d), vec(in_d), bn(in_d)
    raw["w4p"] = jax.random.normal(next(ks), (in_d, in_d), jnp.float32) * 0.1
    raw["b4p"] = vec(in_d)
    raw["w4"], raw["cb4"], raw["bn4"] = conv_w(in_d, out_d), vec(out_d), bn(out_d)
    raw["w5p"] = jax.random.normal(next(ks), (in_d, out_d), jnp.float32) * 0.1
    raw["b5p"] = vec(out_d)
    return raw


# --------------------------------------------------------------------------
# Pure-JAX reference (for correctness check)
# --------------------------------------------------------------------------
def ref_forward(raw, x1_nchw, x2_nchw):
    x1 = jnp.transpose(x1_nchw, (0, 2, 3, 1))
    x2 = jnp.transpose(x2_nchw, (0, 2, 3, 1))
    x = jnp.abs(x1 - x2)

    def bn(y, bn_params):
        gamma, beta, mean, var = bn_params
        return gamma * (y - mean) / jnp.sqrt(var + BN_EPS) + beta

    def dconv(y, w, b, d):
        out = lax.conv_general_dilated(
            y, w, window_strides=(1, 1), padding=[(d, d), (d, d)],
            rhs_dilation=(d, d), dimension_numbers=("NHWC", "HWIO", "NHWC"))
        return out + b

    def c1(y, w, b):
        return jnp.einsum("nhwc,co->nhwo", y, w) + b

    b1 = bn(dconv(x, raw["w1"], raw["cb1"], 7), raw["bn1"])
    p2 = jax.nn.relu(c1(x, raw["w2p"], raw["b2p"]) + b1)
    b2 = bn(dconv(p2, raw["w2"], raw["cb2"], 5), raw["bn2"])
    p3 = jax.nn.relu(c1(x, raw["w3p"], raw["b3p"]) + b2)
    b3 = bn(dconv(p3, raw["w3"], raw["cb3"], 3), raw["bn3"])
    p4 = jax.nn.relu(c1(x, raw["w4p"], raw["b4p"]) + b3)
    b4 = bn(dconv(p4, raw["w4"], raw["cb4"], 1), raw["bn4"])
    out = jax.nn.relu(c1(x, raw["w5p"], raw["b5p"]) + b4)
    return jnp.transpose(out, (0, 3, 1, 2))


# --------------------------------------------------------------------------
if __name__ == "__main__":
    N, IN_D, OUT_D, H, W = 2, 8, 8, 16, 16

    key = jax.random.PRNGKey(0)
    k_x1, k_x2, k_p = jax.random.split(key, 3)
    x1 = jax.random.normal(k_x1, (N, IN_D, H, W), jnp.float32)
    x2 = jax.random.normal(k_x2, (N, IN_D, H, W), jnp.float32)

    raw = init_raw_params(k_p, IN_D, OUT_D)
    fused_params = build_fused_params(raw, W)        # once, outside the jit

    out = jax.jit(tffm_forward)(fused_params, x1, x2)
    out = jax.block_until_ready(out)

    ref = ref_forward(raw, x1, x2)
    assert out.shape == (N, OUT_D, H, W), out.shape
    assert jnp.allclose(out, ref, rtol=2e-3, atol=2e-3), float(
        jnp.max(jnp.abs(out - ref)))

    print("KERNEL_OK")
</pallas_src>

<mosaic_0001>
module attributes {stable_mosaic.version = 11 : i64} {
  func.func @_tffm_kernel(%arg0: i32, %arg1: memref<1x16x128xf32, #tpu.memory_space<vmem>>, %arg2: memref<1x16x128xf32, #tpu.memory_space<vmem>>, %arg3: memref<128x896xf32, #tpu.memory_space<vmem>>, %arg4: memref<1x512xf32, #tpu.memory_space<vmem>>, %arg5: memref<1x128xf32, #tpu.memory_space<vmem>>, %arg6: memref<128x384xf32, #tpu.memory_space<vmem>>, %arg7: memref<1x128xf32, #tpu.memory_space<vmem>>, %arg8: memref<128x384xf32, #tpu.memory_space<vmem>>, %arg9: memref<1x128xf32, #tpu.memory_space<vmem>>, %arg10: memref<128x384xf32, #tpu.memory_space<vmem>>, %arg11: memref<1x128xf32, #tpu.memory_space<vmem>>, %arg12: memref<1x16x128xf32, #tpu.memory_space<vmem>>) attributes {dimension_semantics = [#tpu.dimension_semantics<parallel>], iteration_bounds = array<i64: 2>, scalar_prefetch = 0 : i64, scratch_operands = 0 : i64, tpu.core_type = #tpu.core_type<tc>, window_params = [{transform_indices = @transform_0, window_bounds = array<i64: 1, 16, 128>}, {transform_indices = @transform_1, window_bounds = array<i64: 1, 16, 128>}, {pipeline_mode = #tpu.pipeline_mode<synchronous>, transform_indices = @transform_2, window_bounds = array<i64: 128, 896>}, {pipeline_mode = #tpu.pipeline_mode<synchronous>, transform_indices = @transform_3, window_bounds = array<i64: 1, 512>}, {pipeline_mode = #tpu.pipeline_mode<synchronous>, transform_indices = @transform_4, window_bounds = array<i64: 1, 128>}, {pipeline_mode = #tpu.pipeline_mode<synchronous>, transform_indices = @transform_5, window_bounds = array<i64: 128, 384>}, {pipeline_mode = #tpu.pipeline_mode<synchronous>, transform_indices = @transform_6, window_bounds = array<i64: 1, 128>}, {pipeline_mode = #tpu.pipeline_mode<synchronous>, transform_indices = @transform_7, window_bounds = array<i64: 128, 384>}, {pipeline_mode = #tpu.pipeline_mode<synchronous>, transform_indices = @transform_8, window_bounds = array<i64: 1, 128>}, {pipeline_mode = #tpu.pipeline_mode<synchronous>, transform_indices = @transform_9, window_bounds = array<i64: 128, 384>}, {pipeline_mode = #tpu.pipeline_mode<synchronous>, transform_indices = @transform_10, window_bounds = array<i64: 1, 128>}, {transform_indices = @transform_11, window_bounds = array<i64: 1, 16, 128>}]} {
    %c0 = arith.constant 0 : index
    %c0_0 = arith.constant 0 : index
    %c0_1 = arith.constant 0 : index
    %0 = vector.load %arg1[%c0, %c0_0, %c0_1] : memref<1x16x128xf32, #tpu.memory_space<vmem>>, vector<1x16x128xf32>
    %1 = vector.shape_cast %0 : vector<1x16x128xf32> to vector<16x128xf32>
    %c0_2 = arith.constant 0 : index
    %c0_3 = arith.constant 0 : index
    %c0_4 = arith.constant 0 : index
    %2 = vector.load %arg2[%c0_2, %c0_3, %c0_4] : memref<1x16x128xf32, #tpu.memory_space<vmem>>, vector<1x16x128xf32>
    %3 = vector.shape_cast %2 : vector<1x16x128xf32> to vector<16x128xf32>
    %4 = arith.subf %1, %3 : vector<16x128xf32>
    %5 = math.absf %4 : vector<16x128xf32>
    %c0_5 = arith.constant 0 : index
    %c0_6 = arith.constant 0 : index
    %6 = vector.load %arg3[%c0_5, %c0_6] : memref<128x896xf32, #tpu.memory_space<vmem>>, vector<128x896xf32>
    %cst = arith.constant dense<0.000000e+00> : vector<16x896xf32>
    %7 = tpu.matmul %5, %6, %cst {dimension_numbers = #tpu.dot_dimension_numbers<[1], [0], [0], [1], [0, 0, 1, 1], [], []>} : vector<16x128xf32>, vector<128x896xf32>, vector<16x896xf32> -> vector<16x896xf32>
    %8 = vector.extract_strided_slice %7 {offsets = [0, 0], sizes = [16, 512], strides = [1, 1]} : vector<16x896xf32> to vector<16x512xf32>
    %c0_7 = arith.constant 0 : index
    %c0_8 = arith.constant 0 : index
    %9 = vector.load %arg4[%c0_7, %c0_8] : memref<1x512xf32, #tpu.memory_space<vmem>>, vector<1x512xf32>
    %10 = vector.broadcast %9 : vector<1x512xf32> to vector<16x512xf32>
    %11 = arith.addf %8, %10 : vector<16x512xf32>
    %12 = vector.extract_strided_slice %11 {offsets = [0, 0], sizes = [16, 128], strides = [1, 1]} : vector<16x512xf32> to vector<16x128xf32>
    %13 = vector.extract_strided_slice %11 {offsets = [0, 128], sizes = [16, 128], strides = [1, 1]} : vector<16x512xf32> to vector<16x128xf32>
    %14 = vector.extract_strided_slice %11 {offsets = [0, 256], sizes = [16, 128], strides = [1, 1]} : vector<16x512xf32> to vector<16x128xf32>
    %15 = vector.extract_strided_slice %11 {offsets = [0, 384], sizes = [16, 128], strides = [1, 1]} : vector<16x512xf32> to vector<16x128xf32>
    %16 = vector.extract_strided_slice %7 {offsets = [0, 512], sizes = [16, 384], strides = [1, 1]} : vector<16x896xf32> to vector<16x384xf32>
    %17 = vector.extract_strided_slice %16 {offsets = [0, 0], sizes = [16, 128], strides = [1, 1]} : vector<16x384xf32> to vector<16x128xf32>
    %18 = vector.extract_strided_slice %16 {offsets = [0, 128], sizes = [16, 128], strides = [1, 1]} : vector<16x384xf32> to vector<16x128xf32>
    %19 = vector.extract_strided_slice %16 {offsets = [0, 256], sizes = [16, 128], strides = [1, 1]} : vector<16x384xf32> to vector<16x128xf32>
    %20 = tpu.iota {dimensions = array<i32: 0>} : vector<16x16xi32>
    %21 = tpu.iota {dimensions = array<i32: 1>} : vector<16x16xi32>
    %c7_i32 = arith.constant 7 : i32
    %22 = vector.broadcast %c7_i32 : i32 to vector<16x16xi32>
    %23 = arith.subi %20, %22 : vector<16x16xi32>
    %24 = arith.cmpi eq, %21, %23 : vector<16x16xi32>
    %25 = arith.extui %24 : vector<16x16xi1> to vector<16x16xi32>
    %26 = arith.sitofp %25 : vector<16x16xi32> to vector<16x16xf32>
    %cst_9 = arith.constant dense<0.000000e+00> : vector<16x128xf32>
    %27 = tpu.matmul %26, %17, %cst_9 {dimension_numbers = #tpu.dot_dimension_numbers<[1], [0], [0], [1], [0, 0, 1, 1], [], []>} : vector<16x16xf32>, vector<16x128xf32>, vector<16x128xf32> -> vector<16x128xf32>
    %28 = tpu.iota {dimensions = array<i32: 0>} : vector<16x16xi32>
    %29 = tpu.iota {dimensions = array<i32: 1>} : vector<16x16xi32>
    %c-7_i32 = arith.constant -7 : i32
    %30 = vector.broadcast %c-7_i32 : i32 to vector<16x16xi32>
    %31 = arith.subi %28, %30 : vector<16x16xi32>
    %32 = arith.cmpi eq, %29, %31 : vector<16x16xi32>
    %33 = arith.extui %32 : vector<16x16xi1> to vector<16x16xi32>
    %34 = arith.sitofp %33 : vector<16x16xi32> to vector<16x16xf32>
    %cst_10 = arith.constant dense<0.000000e+00> : vector<16x128xf32>
    %35 = tpu.matmul %34, %19, %cst_10 {dimension_numbers = #tpu.dot_dimension_numbers<[1], [0], [0], [1], [0, 0, 1, 1], [], []>} : vector<16x16xf32>, vector<16x128xf32>, vector<16x128xf32> -> vector<16x128xf32>
    %36 = arith.addf %18, %27 : vector<16x128xf32>
    %37 = arith.addf %36, %35 : vector<16x128xf32>
    %c0_11 = arith.constant 0 : index
    %c0_12 = arith.constant 0 : index
    %38 = vector.load %arg5[%c0_11, %c0_12] : memref<1x128xf32, #tpu.memory_space<vmem>>, vector<1x128xf32>
    %39 = vector.broadcast %38 : vector<1x128xf32> to vector<16x128xf32>
    %40 = arith.addf %37, %39 : vector<16x128xf32>
    %41 = arith.addf %12, %40 : vector<16x128xf32>
    %cst_13 = arith.constant 0.000000e+00 : f32
    %42 = vector.broadcast %cst_13 : f32 to vector<16x128xf32>
    %43 = arith.maximumf %41, %42 : vector<16x128xf32>
    %c0_14 = arith.constant 0 : index
    %c0_15 = arith.constant 0 : index
    %44 = vector.load %arg6[%c0_14, %c0_15] : memref<128x384xf32, #tpu.memory_space<vmem>>, vector<128x384xf32>
    %cst_16 = arith.constant dense<0.000000e+00> : vector<16x384xf32>
    %45 = tpu.matmul %43, %44, %cst_16 {dimension_numbers = #tpu.dot_dimension_numbers<[1], [0], [0], [1], [0, 0, 1, 1], [], []>} : vector<16x128xf32>, vector<128x384xf32>, vector<16x384xf32> -> vector<16x384xf32>
    %46 = vector.extract_strided_slice %45 {offsets = [0, 0], sizes = [16, 128], strides = [1, 1]} : vector<16x384xf32> to vector<16x128xf32>
    %47 = vector.extract_strided_slice %45 {offsets = [0, 128], sizes = [16, 128], strides = [1, 1]} : vector<16x384xf32> to vector<16x128xf32>
    %48 = vector.extract_strided_slice %45 {offsets = [0, 256], sizes = [16, 128], strides = [1, 1]} : vector<16x384xf32> to vector<16x128xf32>
    %49 = tpu.iota {dimensions = array<i32: 0>} : vector<16x16xi32>
    %50 = tpu.iota {dimensions = array<i32: 1>} : vector<16x16xi32>
    %c5_i32 = arith.constant 5 : i32
    %51 = vector.broadcast %c5_i32 : i32 to vector<16x16xi32>
    %52 = arith.subi %49, %51 : vector<16x16xi32>
    %53 = arith.cmpi eq, %50, %52 : vector<16x16xi32>
    %54 = arith.extui %53 : vector<16x16xi1> to vector<16x16xi32>
    %55 = arith.sitofp %54 : vector<16x16xi32> to vector<16x16xf32>
    %cst_17 = arith.constant dense<0.000000e+00> : vector<16x128xf32>
    %56 = tpu.matmul %55, %46, %cst_17 {dimension_numbers = #tpu.dot_dimension_numbers<[1], [0], [0], [1], [0, 0, 1, 1], [], []>} : vector<16x16xf32>, vector<16x128xf32>, vector<16x128xf32> -> vector<16x128xf32>
    %57 = tpu.iota {dimensions = array<i32: 0>} : vector<16x16xi32>
    %58 = tpu.iota {dimensions = array<i32: 1>} : vector<16x16xi32>
    %c-5_i32 = arith.constant -5 : i32
    %59 = vector.broadcast %c-5_i32 : i32 to vector<16x16xi32>
    %60 = arith.subi %57, %59 : vector<16x16xi32>
    %61 = arith.cmpi eq, %58, %60 : vector<16x16xi32>
    %62 = arith.extui %61 : vector<16x16xi1> to vector<16x16xi32>
    %63 = arith.sitofp %62 : vector<16x16xi32> to vector<16x16xf32>
    %cst_18 = arith.constant dense<0.000000e+00> : vector<16x128xf32>
    %64 = tpu.matmul %63, %48, %cst_18 {dimension_numbers = #tpu.dot_dimension_numbers<[1], [0], [0], [1], [0, 0, 1, 1], [], []>} : vector<16x16xf32>, vector<16x128xf32>, vector<16x128xf32> -> vector<16x128xf32>
    %65 = arith.addf %47, %56 : vector<16x128xf32>
    %66 = arith.addf %65, %64 : vector<16x128xf32>
    %c0_19 = arith.constant 0 : index
    %c0_20 = arith.constant 0 : index
    %67 = vector.load %arg7[%c0_19, %c0_20] : memref<1x128xf32, #tpu.memory_space<vmem>>, vector<1x128xf32>
    %68 = vector.broadcast %67 : vector<1x128xf32> to vector<16x128xf32>
    %69 = arith.addf %66, %68 : vector<16x128xf32>
    %70 = arith.addf %13, %69 : vector<16x128xf32>
    %cst_21 = arith.constant 0.000000e+00 : f32
    %71 = vector.broadcast %cst_21 : f32 to vector<16x128xf32>
    %72 = arith.maximumf %70, %71 : vector<16x128xf32>
    %c0_22 = arith.constant 0 : index
    %c0_23 = arith.constant 0 : index
    %73 = vector.load %arg8[%c0_22, %c0_23] : memref<128x384xf32, #tpu.memory_space<vmem>>, vector<128x384xf32>
    %cst_24 = arith.constant dense<0.000000e+00> : vector<16x384xf32>
    %74 = tpu.matmul %72, %73, %cst_24 {dimension_numbers = #tpu.dot_dimension_numbers<[1], [0], [0], [1], [0, 0, 1, 1], [], []>} : vector<16x128xf32>, vector<128x384xf32>, vector<16x384xf32> -> vector<16x384xf32>
    %75 = vector.extract_strided_slice %74 {offsets = [0, 0], sizes = [16, 128], strides = [1, 1]} : vector<16x384xf32> to vector<16x128xf32>
    %76 = vector.extract_strided_slice %74 {offsets = [0, 128], sizes = [16, 128], strides = [1, 1]} : vector<16x384xf32> to vector<16x128xf32>
    %77 = vector.extract_strided_slice %74 {offsets = [0, 256], sizes = [16, 128], strides = [1, 1]} : vector<16x384xf32> to vector<16x128xf32>
    %78 = tpu.iota {dimensions = array<i32: 0>} : vector<16x16xi32>
    %79 = tpu.iota {dimensions = array<i32: 1>} : vector<16x16xi32>
    %c3_i32 = arith.constant 3 : i32
    %80 = vector.broadcast %c3_i32 : i32 to vector<16x16xi32>
    %81 = arith.subi %78, %80 : vector<16x16xi32>
    %82 = arith.cmpi eq, %79, %81 : vector<16x16xi32>
    %83 = arith.extui %82 : vector<16x16xi1> to vector<16x16xi32>
    %84 = arith.sitofp %83 : vector<16x16xi32> to vector<16x16xf32>
    %cst_25 = arith.constant dense<0.000000e+00> : vector<16x128xf32>
    %85 = tpu.matmul %84, %75, %cst_25 {dimension_numbers = #tpu.dot_dimension_numbers<[1], [0], [0], [1], [0, 0, 1, 1], [], []>} : vector<16x16xf32>, vector<16x128xf32>, vector<16x128xf32> -> vector<16x128xf32>
    %86 = tpu.iota {dimensions = array<i32: 0>} : vector<16x16xi32>
    %87 = tpu.iota {dimensions = array<i32: 1>} : vector<16x16xi32>
    %c-3_i32 = arith.constant -3 : i32
    %88 = vector.broadcast %c-3_i32 : i32 to vector<16x16xi32>
    %89 = arith.subi %86, %88 : vector<16x16xi32>
    %90 = arith.cmpi eq, %87, %89 : vector<16x16xi32>
    %91 = arith.extui %90 : vector<16x16xi1> to vector<16x16xi32>
    %92 = arith.sitofp %91 : vector<16x16xi32> to vector<16x16xf32>
    %cst_26 = arith.constant dense<0.000000e+00> : vector<16x128xf32>
    %93 = tpu.matmul %92, %77, %cst_26 {dimension_numbers = #tpu.dot_dimension_numbers<[1], [0], [0], [1], [0, 0, 1, 1], [], []>} : vector<16x16xf32>, vector<16x128xf32>, vector<16x128xf32> -> vector<16x128xf32>
    %94 = arith.addf %76, %85 : vector<16x128xf32>
    %95 = arith.addf %94, %93 : vector<16x128xf32>
    %c0_27 = arith.constant 0 : index
    %c0_28 = arith.constant 0 : index
    %96 = vector.load %arg9[%c0_27, %c0_28] : memref<1x128xf32, #tpu.memory_space<vmem>>, vector<1x128xf32>
    %97 = vector.broadcast %96 : vector<1x128xf32> to vector<16x128xf32>
    %98 = arith.addf %95, %97 : vector<16x128xf32>
    %99 = arith.addf %14, %98 : vector<16x128xf32>
    %cst_29 = arith.constant 0.000000e+00 : f32
    %100 = vector.broadcast %cst_29 : f32 to vector<16x128xf32>
    %101 = arith.maximumf %99, %100 : vector<16x128xf32>
    %c0_30 = arith.constant 0 : index
    %c0_31 = arith.constant 0 : index
    %102 = vector.load %arg10[%c0_30, %c0_31] : memref<128x384xf32, #tpu.memory_space<vmem>>, vector<128x384xf32>
    %cst_32 = arith.constant dense<0.000000e+00> : vector<16x384xf32>
    %103 = tpu.matmul %101, %102, %cst_32 {dimension_numbers = #tpu.dot_dimension_numbers<[1], [0], [0], [1], [0, 0, 1, 1], [], []>} : vector<16x128xf32>, vector<128x384xf32>, vector<16x384xf32> -> vector<16x384xf32>
    %104 = vector.extract_strided_slice %103 {offsets = [0, 0], sizes = [16, 128], strides = [1, 1]} : vector<16x384xf32> to vector<16x128xf32>
    %105 = vector.extract_strided_slice %103 {offsets = [0, 128], sizes = [16, 128], strides = [1, 1]} : vector<16x384xf32> to vector<16x128xf32>
    %106 = vector.extract_strided_slice %103 {offsets = [0, 256], sizes = [16, 128], strides = [1, 1]} : vector<16x384xf32> to vector<16x128xf32>
    %107 = tpu.iota {dimensions = array<i32: 0>} : vector<16x16xi32>
    %108 = tpu.iota {dimensions = array<i32: 1>} : vector<16x16xi32>
    %c1_i32 = arith.constant 1 : i32
    %109 = vector.broadcast %c1_i32 : i32 to vector<16x16xi32>
    %110 = arith.subi %107, %109 : vector<16x16xi32>
    %111 = arith.cmpi eq, %108, %110 : vector<16x16xi32>
    %112 = arith.extui %111 : vector<16x16xi1> to vector<16x16xi32>
    %113 = arith.sitofp %112 : vector<16x16xi32> to vector<16x16xf32>
    %cst_33 = arith.constant dense<0.000000e+00> : vector<16x128xf32>
    %114 = tpu.matmul %113, %104, %cst_33 {dimension_numbers = #tpu.dot_dimension_numbers<[1], [0], [0], [1], [0, 0, 1, 1], [], []>} : vector<16x16xf32>, vector<16x128xf32>, vector<16x128xf32> -> vector<16x128xf32>
    %115 = tpu.iota {dimensions = array<i32: 0>} : vector<16x16xi32>
    %116 = tpu.iota {dimensions = array<i32: 1>} : vector<16x16xi32>
    %c-1_i32 = arith.constant -1 : i32
    %117 = vector.broadcast %c-1_i32 : i32 to vector<16x16xi32>
    %118 = arith.subi %115, %117 : vector<16x16xi32>
    %119 = arith.cmpi eq, %116, %118 : vector<16x16xi32>
    %120 = arith.extui %119 : vector<16x16xi1> to vector<16x16xi32>
    %121 = arith.sitofp %120 : vector<16x16xi32> to vector<16x16xf32>
    %cst_34 = arith.constant dense<0.000000e+00> : vector<16x128xf32>
    %122 = tpu.matmul %121, %106, %cst_34 {dimension_numbers = #tpu.dot_dimension_numbers<[1], [0], [0], [1], [0, 0, 1, 1], [], []>} : vector<16x16xf32>, vector<16x128xf32>, vector<16x128xf32> -> vector<16x128xf32>
    %123 = arith.addf %105, %114 : vector<16x128xf32>
    %124 = arith.addf %123, %122 : vector<16x128xf32>
    %c0_35 = arith.constant 0 : index
    %c0_36 = arith.constant 0 : index
    %125 = vector.load %arg11[%c0_35, %c0_36] : memref<1x128xf32, #tpu.memory_space<vmem>>, vector<1x128xf32>
    %126 = vector.broadcast %125 : vector<1x128xf32> to vector<16x128xf32>
    %127 = arith.addf %124, %126 : vector<16x128xf32>
    %128 = arith.addf %15, %127 : vector<16x128xf32>
    %cst_37 = arith.constant 0.000000e+00 : f32
    %129 = vector.broadcast %cst_37 : f32 to vector<16x128xf32>
    %130 = arith.maximumf %128, %129 : vector<16x128xf32>
    %c0_38 = arith.constant 0 : index
    %c0_39 = arith.constant 0 : index
    %c0_40 = arith.constant 0 : index
    %131 = vector.load %arg12[%c0_38, %c0_39, %c0_40] : memref<1x16x128xf32, #tpu.memory_space<vmem>>, vector<1x16x128xf32>
    %132 = vector.shape_cast %131 : vector<1x16x128xf32> to vector<16x128xf32>
    %133 = vector.shape_cast %130 : vector<16x128xf32> to vector<1x16x128xf32>
    tpu.vector_store %arg12[%c0_38, %c0_39, %c0_40], %133 {strides = array<i32>} : memref<1x16x128xf32, #tpu.memory_space<vmem>>, vector<1x16x128xf32>,
    return
  }
  func.func @transform_0(%arg0: i32) -> (i32, i32, i32) {
    %c0_i32 = arith.constant 0 : i32
    %c0_i32_0 = arith.constant 0 : i32
    %c0_i32_1 = arith.constant 0 : i32
    return %arg0, %c0_i32, %c0_i32_0 : i32, i32, i32
  }
  func.func @transform_1(%arg0: i32) -> (i32, i32, i32) {
    %c0_i32 = arith.constant 0 : i32
    %c0_i32_0 = arith.constant 0 : i32
    %c0_i32_1 = arith.constant 0 : i32
    return %arg0, %c0_i32, %c0_i32_0 : i32, i32, i32
  }
  func.func @transform_2(%arg0: i32) -> (i32, i32) {
    %c0_i32 = arith.constant 0 : i32
    %c0_i32_0 = arith.constant 0 : i32
    %c0_i32_1 = arith.constant 0 : i32
    return %c0_i32, %c0_i32_0 : i32, i32
  }
  func.func @transform_3(%arg0: i32) -> (i32, i32) {
    %c0_i32 = arith.constant 0 : i32
    %c0_i32_0 = arith.constant 0 : i32
    %c0_i32_1 = arith.constant 0 : i32
    return %c0_i32, %c0_i32_0 : i32, i32
  }
  func.func @transform_4(%arg0: i32) -> (i32, i32) {
    %c0_i32 = arith.constant 0 : i32
    %c0_i32_0 = arith.constant 0 : i32
    %c0_i32_1 = arith.constant 0 : i32
    return %c0_i32, %c0_i32_0 : i32, i32
  }
  func.func @transform_5(%arg0: i32) -> (i32, i32) {
    %c0_i32 = arith.constant 0 : i32
    %c0_i32_0 = arith.constant 0 : i32
    %c0_i32_1 = arith.constant 0 : i32
    return %c0_i32, %c0_i32_0 : i32, i32
  }
  func.func @transform_6(%arg0: i32) -> (i32, i32) {
    %c0_i32 = arith.constant 0 : i32
    %c0_i32_0 = arith.constant 0 : i32
    %c0_i32_1 = arith.constant 0 : i32
    return %c0_i32, %c0_i32_0 : i32, i32
  }
  func.func @transform_7(%arg0: i32) -> (i32, i32) {
    %c0_i32 = arith.constant 0 : i32
    %c0_i32_0 = arith.constant 0 : i32
    %c0_i32_1 = arith.constant 0 : i32
    return %c0_i32, %c0_i32_0 : i32, i32
  }
  func.func @transform_8(%arg0: i32) -> (i32, i32) {
    %c0_i32 = arith.constant 0 : i32
    %c0_i32_0 = arith.constant 0 : i32
    %c0_i32_1 = arith.constant 0 : i32
    return %c0_i32, %c0_i32_0 : i32, i32
  }
  func.func @transform_9(%arg0: i32) -> (i32, i32) {
    %c0_i32 = arith.constant 0 : i32
    %c0_i32_0 = arith.constant 0 : i32
    %c0_i32_1 = arith.constant 0 : i32
    return %c0_i32, %c0_i32_0 : i32, i32
  }
  func.func @transform_10(%arg0: i32) -> (i32, i32) {
    %c0_i32 = arith.constant 0 : i32
    %c0_i32_0 = arith.constant 0 : i32
    %c0_i32_1 = arith.constant 0 : i32
    return %c0_i32, %c0_i32_0 : i32, i32
  }
  func.func @transform_11(%arg0: i32) -> (i32, i32, i32) {
    %c0_i32 = arith.constant 0 : i32
    %c0_i32_0 = arith.constant 0 : i32
    %c0_i32_1 = arith.constant 0 : i32
    return %arg0, %c0_i32, %c0_i32_0 : i32, i32, i32
  }
}

</mosaic_0001>

<bundles_post_ra>
// kernel: tffm_forward.1
= control target key start
LH: loop header
LB: loop body
LE: loop exit
PB: predicated region body
PF: predicated region fallthrough
CT: control target
= control target key end

     0   :  { %16 = vsyncpa [#allocation3], 0  ;;  %s1711_s17 = smov 0   ;;  %s2310_s0 = inlined_call_operand.vmem [shape: f32[2,16,128], index: 0, kind: input, shape index: {}]   ;;  %s2311_s1 = inlined_call_operand.vmem [shape: f32[2,16,128], index: 1, kind: input, shape index: {}]   ;;  %s2312_s2 = inlined_call_operand.hbm [shape: f32[128,896], index: 2, kind: input, shape index: {}]   ;;  %s2313_s3 = inlined_call_operand.vmem [shape: f32[1,512], index: 3, kind: input, shape index: {}]   ;;  %s2314_s4 = inlined_call_operand.vmem [shape: f32[1,128], index: 4, kind: input, shape index: {}]   ;;  %s2315_s5 = inlined_call_operand.vmem [shape: f32[128,384], index: 5, kind: input, shape index: {}]   ;;  %s2316_s6 = inlined_call_operand.vmem [shape: f32[1,128], index: 6, kind: input, shape index: {}]   ;;  %s2317_s7 = inlined_call_operand.vmem [shape: f32[128,384], index: 7, kind: input, shape index: {}]   ;;  %s2318_s8 = inlined_call_operand.vmem [shape: f32[1,128], index: 8, kind: input, shape index: {}]   ;;  %s2319_s9 = inlined_call_operand.vmem [shape: f32[128,384], index: 9, kind: input, shape index: {}]   ;;  %s2320_s10 = inlined_call_operand.vmem [shape: f32[1,128], index: 10, kind: input, shape index: {}]   ;;  %s2321_s11 = inlined_call_operand.vmem [shape: f32[2,16,128], index: 11, kind: output, shape index: {}]  }
   0x1 LB: > { %s305_s20 = sshll.u32 %s2312_s2, 4  ;;  %s1720_s21 = sadd.s32 4294967295, %s1645_s17   ;;  %s1645_s17 = sphi %s1711_s17, %s22_s17   ;;  %s306_s20 = int_to_ptr.hbm [resolvable:$true] %s305_s20 }
   0x2   : > { %p1515_p0 = scmp.ge.s32.totalorder %s1645_s17, 1  ;;  %p294_p1 = scmp.lt.s32.totalorder %s1645_s17, 3 }
   0x3   : > { %p1587_p2 = scmp.eq.s32.totalorder %s1720_s21, 0  ;;  %s1647_s22 = smov [#allocation2]  }
   0x4   : > { %p295_p3 = pnand %p1515_p0, %p294_p1  ;;  %s307_s23 = sshll.u32 %s1647_s22, 4  ;;  %s308_s23 = int_to_ptr.vmem [resolvable:$true] %s307_s23 }
   0x5   : > { %s1648_s24 = smov 896   ;;  %s1649_s25 = smov 56  }
   0x6   : > { %p1583_p4 = pneg %p295_p3  ;;  %363 = sbr.rel (%p295_p3) target bundleno = 1257 (0x4e9), region = 64 }
   0x8   : > { %p1584_p5 = pnand %p1587_p2, %p1583_p4 }
   0xa   : > { %1586 = dma.hbm_to_vmem [thread:$0]  (!%p1584_p5), %s306_s20, 14336, %s308_s23, [#allocation3], %s1648_s24, %s1648_s24, %s1649_s25  }
   0xb   : > { %1640 = dma.done.wait (%p1587_p2), [#allocation3], 14336  }
   0xc   : > { %1642 = vsyncadd (%p1587_p2), [#allocation3], 4294952960  ;;  %v537_v0 = vld [vmem:[#allocation2 + $0x348] sm:$0xff]  ;;  %v539_v1 = vld [vmem:[#allocation2 + $0x358] sm:$0xff]  ;;  %p409_p6 = scmp.lt.s32.totalorder %s1720_s21, 1  ;;  %vm736_vm1 = vcmask 130048  }
   0xd   : > { %v530_v2 = vld [vmem:[#allocation2 + $0x310] sm:$0xff]  ;;  %544 = vmatpush.msra.mxu0 %v537_v0  ;;  %590 = vmatpush.msra.mxu2 %v539_v1  ;;  %v532_v3 = vld [vmem:[#allocation2 + $0x320] sm:$0xff]  ;;  %v523_v4 = vld [vmem:[#allocation2 + $0x2d8] sm:$0xff] }
   0xe   : > { %v525_v5 = vld [vmem:[#allocation2 + $0x2e8] sm:$0xff]  ;;  %v516_v6 = vld [vmem:[#allocation2 + $0x2a0] sm:$0xff]  ;;  %v518_v7 = vld [vmem:[#allocation2 + $0x2b0] sm:$0xff]  ;;  %s2323_s21 = smov (!%p409_p6, %s1720_s21), 1 }
   0xf   : > { %545 = vmatpush.msra.mxu0 %v530_v2  ;;  %591 = vmatpush.msra.mxu2 %v532_v3  ;;  %v509_v8 = vld [vmem:[#allocation2 + $0x268] sm:$0xff]  ;;  %v511_v9 = vld [vmem:[#allocation2 + $0x278] sm:$0xff]  ;;  %v502_v10 = vld [vmem:[#allocation2 + $0x230] sm:$0xff]  ;;  %s1727_s26 = sshll.u32 %s2323_s21, 4 }
  0x10   : > { %v504_v11 = vld [vmem:[#allocation2 + $0x240] sm:$0xff]  ;;  %v495_v12 = vld [vmem:[#allocation2 + $0x1f8] sm:$0xff]  ;;  %v497_v13 = vld [vmem:[#allocation2 + $0x208] sm:$0xff]  ;;  %s413_s29 = scalar_lea.vmem %s2310_s0, %s1727_s26  ;;  %s418_s13 = scalar_lea.vmem %s2311_s1, %s1727_s26 }
  0x11   : > { %546 = vmatpush.msra.mxu0 %v523_v4  ;;  %592 = vmatpush.msra.mxu2 %v525_v5  ;;  %v488_v14 = vld [vmem:[#allocation2 + $0x1c0] sm:$0xff]  ;;  %v490_v15 = vld [vmem:[#allocation2 + $0x1d0] sm:$0xff]  ;;  %v481_v16 = vld [vmem:[#allocation2 + $0x188] sm:$0xff]  ;;  %s423_s27 = scalar_lea.vmem %s2321_s11, %s1727_s26 }
  0x12   : > { %v483_v17 = vld [vmem:[#allocation2 + $0x198] sm:$0xff]  ;;  %v474_v18 = vld [vmem:[#allocation2 + $0x150] sm:$0xff]  ;;  %v476_v19 = vld [vmem:[#allocation2 + $0x160] sm:$0xff] }
  0x13   : > { %547 = vmatpush.msra.mxu0 %v516_v6  ;;  %593 = vmatpush.msra.mxu2 %v518_v7  ;;  %v467_v20 = vld [vmem:[#allocation2 + $0x118] sm:$0xff]  ;;  %v469_v21 = vld [vmem:[#allocation2 + $0x128] sm:$0xff]  ;;  %v460_v22 = vld [vmem:[#allocation2 + $0xe0] sm:$0xff] }
  0x14   : > { %v462_v23 = vld [vmem:[#allocation2 + $0xf0] sm:$0xff]  ;;  %v453_v24 = vld [vmem:[#allocation2 + $0xa8] sm:$0xff]  ;;  %v455_v25 = vld [vmem:[#allocation2 + $0xb8] sm:$0xff] }
  0x15   : > { %548 = vmatpush.msra.mxu0 %v509_v8  ;;  %594 = vmatpush.msra.mxu2 %v511_v9  ;;  %v424_v26 = vld [vmem:[%s413_s29] sm:$0xff]  ;;  %v446_v28 = vld [vmem:[#allocation2 + $0x70] sm:$0xff]  ;;  %v439_v31 = vld [vmem:[#allocation2 + $0x38] sm:$0xff] }
  0x16   : > { %v426_v27 = vld [vmem:[%s418_s13] sm:$0xff]  ;;  %v441_v32 = vld [vmem:[#allocation2 + $0x48] sm:$0xff]  ;;  %v434_v34 = vld [vmem:[#allocation2 + $0x10] sm:$0xff] }
  0x17   : > { %549 = vmatpush.msra.mxu0 %v502_v10  ;;  %595 = vmatpush.msra.mxu2 %v504_v11  ;;  %v448_v29 = vld [vmem:[#allocation2 + $0x80] sm:$0xff]  ;;  %v428_v30 = vsub.f32 %v424_v26, %v426_v27  ;;  %v541_v35 = vld [vmem:[#allocation2 + $0x368] sm:$0xff]  ;;  %v543_v36 = vld [vmem:[#allocation2 + $0x378] sm:$0xff] }
  0x18   : > { %v432_v33 = vld [vmem:[#allocation2] sm:$0xff]  ;;  %v425_v38 = vld [vmem:[%s413_s29 + $0x8] sm:$0xff]  ;;  %v534_v40 = vld [vmem:[#allocation2 + $0x330] sm:$0xff] }
  0x19   : > { %550 = vmatpush.msra.mxu0 %v495_v12  ;;  %596 = vmatpush.msra.mxu2 %v497_v13  ;;  %v1737_v37 = vand.u32 2147483647, %v428_v30  ;;  %v427_v39 = vld [vmem:[%s418_s13 + $0x8] sm:$0xff]  ;;  %v536_v41 = vld [vmem:[#allocation2 + $0x340] sm:$0xff]  ;;  %v527_v42 = vld [vmem:[#allocation2 + $0x2f8] sm:$0xff] }
  0x1a   : > { %v529_v43 = vld [vmem:[#allocation2 + $0x308] sm:$0xff]  ;;  %v429_v44 = vsub.f32 %v425_v38, %v427_v39  ;;  %v520_v45 = vld [vmem:[#allocation2 + $0x2c0] sm:$0xff]  ;;  %v522_v46 = vld [vmem:[#allocation2 + $0x2d0] sm:$0xff] }
  0x1b   : > { %551 = vmatpush.msra.mxu0 %v488_v14  ;;  %597 = vmatpush.msra.mxu2 %v490_v15  ;;  %v513_v47 = vld [vmem:[#allocation2 + $0x288] sm:$0xff]  ;;  %v515_v48 = vld [vmem:[#allocation2 + $0x298] sm:$0xff]  ;;  %v506_v50 = vld [vmem:[#allocation2 + $0x250] sm:$0xff] }
  0x1c   : > { %v1741_v49 = vand.u32 2147483647, %v429_v44  ;;  %v508_v51 = vld [vmem:[#allocation2 + $0x260] sm:$0xff]  ;;  %v538_v52 = vld [vmem:[#allocation2 + $0x350] sm:$0xff]  ;;  %v499_v54 = vld [vmem:[#allocation2 + $0x218] sm:$0xff] }
  0x1d   : > { %552 = vmatpush.msra.mxu0 %v481_v16  ;;  %598 = vmatpush.msra.mxu2 %v483_v17  ;;  %v540_v53 = vld [vmem:[#allocation2 + $0x360] sm:$0xff]  ;;  %v501_v55 = vld [vmem:[#allocation2 + $0x228] sm:$0xff]  ;;  %v531_v56 = vld [vmem:[#allocation2 + $0x318] sm:$0xff] }
  0x1e   : > { %v533_v57 = vld [vmem:[#allocation2 + $0x328] sm:$0xff]  ;;  %v492_v58 = vld [vmem:[#allocation2 + $0x1e0] sm:$0xff]  ;;  %v494_v59 = vld [vmem:[#allocation2 + $0x1f0] sm:$0xff]  ;;  %567 = vmatpush.msra.mxu1 %v538_v52  ;;  %613 = vmatpush.msra.mxu3 %v540_v53 }
  0x1f   : > { %553 = vmatpush.msra.mxu0 %v474_v18  ;;  %599 = vmatpush.msra.mxu2 %v476_v19  ;;  %v524_v60 = vld [vmem:[#allocation2 + $0x2e0] sm:$0xff]  ;;  %v526_v61 = vld [vmem:[#allocation2 + $0x2f0] sm:$0xff]  ;;  %v485_v62 = vld [vmem:[#allocation2 + $0x1a8] sm:$0xff] }
  0x20   : > { %v487_v63 = vld [vmem:[#allocation2 + $0x1b8] sm:$0xff]  ;;  %568 = vmatpush.msra.mxu1 %v531_v56  ;;  %614 = vmatpush.msra.mxu3 %v533_v57  ;;  %v517_v0 = vld [vmem:[#allocation2 + $0x2a8] sm:$0xff]  ;;  %v478_v2 = vld [vmem:[#allocation2 + $0x170] sm:$0xff] }
  0x21   : > { %554 = vmatpush.msra.mxu0 %v467_v20  ;;  %600 = vmatpush.msra.mxu2 %v469_v21  ;;  %v519_v1 = vld [vmem:[#allocation2 + $0x2b8] sm:$0xff]  ;;  %v480_v3 = vld [vmem:[#allocation2 + $0x180] sm:$0xff]  ;;  %v510_v4 = vld [vmem:[#allocation2 + $0x270] sm:$0xff] }
  0x22   : > { %569 = vmatpush.msra.mxu1 %v524_v60  ;;  %615 = vmatpush.msra.mxu3 %v526_v61  ;;  %v512_v5 = vld [vmem:[#allocation2 + $0x280] sm:$0xff]  ;;  %v471_v6 = vld [vmem:[#allocation2 + $0x138] sm:$0xff]  ;;  %v473_v7 = vld [vmem:[#allocation2 + $0x148] sm:$0xff]  ;;  %v723_v61 = vlaneseq }
  0x23   : > { %555 = vmatpush.msra.mxu0 %v460_v22  ;;  %601 = vmatpush.msra.mxu2 %v462_v23  ;;  %v503_v8 = vld [vmem:[#allocation2 + $0x238] sm:$0xff]  ;;  %v505_v9 = vld [vmem:[#allocation2 + $0x248] sm:$0xff]  ;;  %v464_v10 = vld [vmem:[#allocation2 + $0x100] sm:$0xff] }
  0x24   : > { %570 = vmatpush.msra.mxu1 %v517_v0  ;;  %616 = vmatpush.msra.mxu3 %v519_v1  ;;  %v466_v11 = vld [vmem:[#allocation2 + $0x110] sm:$0xff]  ;;  %v496_v12 = vld [vmem:[#allocation2 + $0x200] sm:$0xff]  ;;  %v457_v14 = vld [vmem:[#allocation2 + $0xc8] sm:$0xff]  ;;  %v1765_v1 = vand.u32 127, %v723_v61 }
  0x25   : > { %556 = vmatpush.msra.mxu0 %v453_v24  ;;  %602 = vmatpush.msra.mxu2 %v455_v25  ;;  %v498_v13 = vld [vmem:[#allocation2 + $0x210] sm:$0xff]  ;;  %v459_v15 = vld [vmem:[#allocation2 + $0xd8] sm:$0xff]  ;;  %v489_v16 = vld [vmem:[#allocation2 + $0x1c8] sm:$0xff] }
  0x26   : > { %571 = vmatpush.msra.mxu1 %v510_v4  ;;  %617 = vmatpush.msra.mxu3 %v512_v5  ;;  %v491_v17 = vld [vmem:[#allocation2 + $0x1d8] sm:$0xff]  ;;  %v450_v18 = vld [vmem:[#allocation2 + $0x90] sm:$0xff]  ;;  %v452_v19 = vld [vmem:[#allocation2 + $0xa0] sm:$0xff]  ;;  %v1650_v5 = vmov 0.0  }
  0x27   : > { %557 = vmatpush.msra.mxu0 %v446_v28  ;;  %603 = vmatpush.msra.mxu2 %v448_v29  ;;  %v482_v20 = vld [vmem:[#allocation2 + $0x190] sm:$0xff]  ;;  %v484_v21 = vld [vmem:[#allocation2 + $0x1a0] sm:$0xff]  ;;  %v443_v22 = vld [vmem:[#allocation2 + $0x58] sm:$0xff] }
  0x28   : > { %572 = vmatpush.msra.mxu1 %v503_v8  ;;  %618 = vmatpush.msra.mxu3 %v505_v9  ;;  %v445_v23 = vld [vmem:[#allocation2 + $0x68] sm:$0xff]  ;;  %v475_v24 = vld [vmem:[#allocation2 + $0x158] sm:$0xff]  ;;  %v436_v26 = vld [vmem:[#allocation2 + $0x20] sm:$0xff] }
  0x29   : > { %558 = vmatpush.msra.mxu0 %v439_v31  ;;  %604 = vmatpush.msra.mxu2 %v441_v32  ;;  %v477_v25 = vld [vmem:[#allocation2 + $0x168] sm:$0xff]  ;;  %v438_v27 = vld [vmem:[#allocation2 + $0x30] sm:$0xff]  ;;  %v468_v28 = vld [vmem:[#allocation2 + $0x120] sm:$0xff] }
  0x2a   : > { %573 = vmatpush.msra.mxu1 %v496_v12  ;;  %619 = vmatpush.msra.mxu3 %v498_v13  ;;  %v461_v29 = vld [vmem:[#allocation2 + $0xe8] sm:$0xff]  ;;  %v454_v30 = vld [vmem:[#allocation2 + $0xb0] sm:$0xff]  ;;  %v447_v31 = vld [vmem:[#allocation2 + $0x78] sm:$0xff] }
  0x2b   : > { %559 = vmatpush.msra.mxu0 %v432_v33  ;;  %605 = vmatpush.msra.mxu2 %v434_v34  ;;  %v440_v32 = vld [vmem:[#allocation2 + $0x40] sm:$0xff]  ;;  %v470_v33 = vld [vmem:[#allocation2 + $0x130] sm:$0xff]  ;;  %v433_v34 = vld [vmem:[#allocation2 + $0x8] sm:$0xff] }
  0x2c   : > { %560 = vmatmul.f32.vlgmr.msra.gmra.mxu0 %v1737_v37  ;;  %606 = vmatmul.f32.vlgmr.msra.gmra.mxu2 %v1737_v37  ;;  %v456_v38 = vld [vmem:[#allocation2 + $0xc0] sm:$0xff]  ;;  %v535_v39 = vld [vmem:[#allocation2 + $0x338] sm:$0xff]  ;;  %v465_v53 = vld [vmem:[#allocation2 + $0x108] sm:$0xff] }
  0x2d   : > { %636 = vmatpush.msrb.mxu0 %v541_v35  ;;  %682 = vmatpush.msrb.mxu2 %v543_v36  ;;  %v463_v35 = vld [vmem:[#allocation2 + $0xf8] sm:$0xff]  ;;  %v542_v36 = vld [vmem:[#allocation2 + $0x370] sm:$0xff]  ;;  %v472_v52 = vld [vmem:[#allocation2 + $0x140] sm:$0xff] }
  0x2e   : > { %574 = vmatpush.msra.mxu1 %v489_v16  ;;  %620 = vmatpush.msra.mxu3 %v491_v17  ;;  %v435_v44 = vld [vmem:[#allocation2 + $0x18] sm:$0xff]  ;;  %v444_v57 = vld [vmem:[#allocation2 + $0x60] sm:$0xff]  ;;  %v862_v13 = vld [vmem:[%s2315_s5 + $0x168] sm:$0xff] }
  0x2f   : > { %637 = vmatpush.msrb.mxu0 %v534_v40  ;;  %683 = vmatpush.msrb.mxu2 %v536_v41  ;;  %v449_v40 = vld [vmem:[#allocation2 + $0x88] sm:$0xff]  ;;  %v528_v41 = vld [vmem:[#allocation2 + $0x300] sm:$0xff]  ;;  %v451_v56 = vld [vmem:[#allocation2 + $0x98] sm:$0xff] }
  0x30   : > { %575 = vmatpush.msra.mxu1 %v482_v20  ;;  %621 = vmatpush.msra.mxu3 %v484_v21  ;;  %v859_v16 = vld [vmem:[%s2315_s5 + $0x150] sm:$0xff]  ;;  %v860_v17 = vld [vmem:[%s2315_s5 + $0x158] sm:$0xff]  ;;  %v857_v20 = vld [vmem:[%s2315_s5 + $0x140] sm:$0xff] }
  0x31   : > { %638 = vmatpush.msrb.mxu0 %v527_v42  ;;  %684 = vmatpush.msrb.mxu2 %v529_v43  ;;  %v442_v42 = vld [vmem:[#allocation2 + $0x50] sm:$0xff]  ;;  %v521_v43 = vld [vmem:[#allocation2 + $0x2c8] sm:$0xff] }
  0x32   : > { %576 = vmatpush.msra.mxu1 %v475_v24  ;;  %622 = vmatpush.msra.mxu3 %v477_v25  ;;  %v858_v21 = vld [vmem:[%s2315_s5 + $0x148] sm:$0xff]  ;;  %v855_v24 = vld [vmem:[%s2315_s5 + $0x130] sm:$0xff] }
  0x33   : > { %639 = vmatpush.msrb.mxu0 %v520_v45  ;;  %685 = vmatpush.msrb.mxu2 %v522_v46  ;;  %v514_v45 = vld [vmem:[#allocation2 + $0x290] sm:$0xff]  ;;  %v507_v46 = vld [vmem:[#allocation2 + $0x258] sm:$0xff]  ;;  %v850_v25 = vld [vmem:[%s2315_s5 + $0x108] sm:$0xff] }
  0x34   : > { %563 = vmatmul.f32.gmra.mxu0 %v1741_v49  ;;  %609 = vmatmul.f32.gmra.mxu2 %v1741_v49 }
  0x35   : > { %640 = vmatpush.msrb.mxu0 %v513_v47  ;;  %686 = vmatpush.msrb.mxu2 %v515_v48  ;;  %v500_v47 = vld [vmem:[#allocation2 + $0x220] sm:$0xff]  ;;  %v493_v48 = vld [vmem:[#allocation2 + $0x1e8] sm:$0xff] }
  0x36   : > { %577 = vmatpush.msra.mxu1 %v468_v28  ;;  %623 = vmatpush.msra.mxu3 %v470_v33  ;;  %v847_v28 = vld [vmem:[%s2315_s5 + $0xf0] sm:$0xff]  ;;  %v846_v33 = vld [vmem:[%s2315_s5 + $0xe8] sm:$0xff] }
  0x37   : > { %641 = vmatpush.msrb.mxu0 %v506_v50  ;;  %687 = vmatpush.msrb.mxu2 %v508_v51  ;;  %v486_v50 = vld [vmem:[#allocation2 + $0x1b0] sm:$0xff]  ;;  %v479_v51 = vld [vmem:[#allocation2 + $0x178] sm:$0xff] }
  0x38   : > { %578 = vmatpush.msra.mxu1 %v461_v29  ;;  %624 = vmatpush.msra.mxu3 %v463_v35  ;;  %v848_v29 = vld [vmem:[%s2315_s5 + $0xf8] sm:$0xff]  ;;  %v842_v35 = vld [vmem:[%s2315_s5 + $0xc8] sm:$0xff] }
  0x39   : > { %642 = vmatpush.msrb.mxu0 %v499_v54  ;;  %688 = vmatpush.msrb.mxu2 %v501_v55  ;;  %v458_v54 = vld [vmem:[#allocation2 + $0xd0] sm:$0xff] }
  0x3a   : > { %579 = vmatpush.msra.mxu1 %v454_v30  ;;  %625 = vmatpush.msra.mxu3 %v456_v38  ;;  %v849_v30 = vld [vmem:[%s2315_s5 + $0x100] sm:$0xff]  ;;  %v838_v38 = vld [vmem:[%s2315_s5 + $0xa8] sm:$0xff] }
  0x3b   : > { %643 = vmatpush.msrb.mxu0 %v492_v58  ;;  %689 = vmatpush.msrb.mxu2 %v494_v59  ;;  %v437_v58 = vld [vmem:[#allocation2 + $0x28] sm:$0xff] }
  0x3c   : > { %580 = vmatpush.msra.mxu1 %v447_v31  ;;  %626 = vmatpush.msra.mxu3 %v449_v40  ;;  %v844_v31 = vld [vmem:[%s2315_s5 + $0xd8] sm:$0xff] }
  0x3d   : > { %644 = vmatpush.msrb.mxu0 %v485_v62  ;;  %690 = vmatpush.msrb.mxu2 %v487_v63  ;;  %v1763_v63 = vshrl.u32 %v723_v61, 7  ;;  %v840_v40 = vld [vmem:[%s2315_s5 + $0xb8] sm:$0xff] }
  0x3e   : > { %581 = vmatpush.msra.mxu1 %v440_v32  ;;  %627 = vmatpush.msra.mxu3 %v442_v42  ;;  %v845_v32 = vld [vmem:[%s2315_s5 + $0xe0] sm:$0xff]  ;;  %v836_v42 = vld [vmem:[%s2315_s5 + $0x98] sm:$0xff] }
  0x3f   : > { %645 = vmatpush.msrb.mxu0 %v478_v2  ;;  %691 = vmatpush.msrb.mxu2 %v480_v3  ;;  %v1526_v2 = vadd.s32 4294967289, %v1763_v63  ;;  %v1770_v4 = vadd.s32 8, %v1763_v63  ;;  %v1532_v9 = vadd.s32 7, %v1763_v63  ;;  %v820_v61 = vld [vmem:[%s2315_s5 + $0x18] sm:$0xff] }
  0x40   : > { %582 = vmatpush.msra.mxu1 %v433_v34  ;;  %628 = vmatpush.msra.mxu3 %v435_v44  ;;  %v841_v34 = vld [vmem:[%s2315_s5 + $0xc0] sm:$0xff]  ;;  %v832_v44 = vld [vmem:[%s2315_s5 + $0x78] sm:$0xff] }
  0x41   : > { %646 = vmatpush.msrb.mxu0 %v471_v6  ;;  %692 = vmatpush.msrb.mxu2 %v473_v7  ;;  %vm730_vm0 = vcmp.eq.s32.totalorder %v1765_v1, %v1526_v2  ;;  %v1527_v6 = vadd.s32 4294967289, %v1770_v4  ;;  %vm768_vm3 = vcmp.eq.s32.totalorder %v1765_v1, %v1532_v9  ;;  %v822_v2 = vld [vmem:[%s2315_s5 + $0x28] sm:$0xff] }
  0x42   : > { %659 = vmatpush.msrb.mxu1 %v542_v36  ;;  %629 = vmatmul.f32.vlgmr.msra.gmra.mxu3 %v1737_v37  ;;  %v843_v36 = vld [vmem:[%s2315_s5 + $0xd0] sm:$0xff] }
  0x43   : > { %647 = vmatpush.msrb.mxu0 %v464_v10  ;;  %693 = vmatpush.msrb.mxu2 %v466_v11  ;;  %vm731_vm2 = vcmp.eq.s32.totalorder %v1765_v1, %v1527_v6  ;;  %v1534_v10 = vsel %vm768_vm3, 1.0, %v1650_v5  ;;  %v1533_v11 = vadd.s32 7, %v1770_v4  ;;  %v818_v6 = vld [vmem:[%s2315_s5 + $0x8] sm:$0xff] }
  0x44   : > { %583 = vmatmul.f32.vlgmr.msra.gmra.mxu1 %v1737_v37  ;;  %v1529_v8 = vsel %vm731_vm2, 1.0, %v1650_v5 }
  0x45   : > { %648 = vmatpush.msrb.mxu0 %v457_v14  ;;  %694 = vmatpush.msrb.mxu2 %v459_v15  ;;  %vm769_vm4 = vcmp.eq.s32.totalorder %v1765_v1, %v1533_v11  ;;  %v863_v14 = vld [vmem:[%s2315_s5 + $0x170] sm:$0xff]  ;;  %v864_v15 = vld [vmem:[%s2315_s5 + $0x178] sm:$0xff] }
  0x46   : > { %660 = vmatpush.msrb.mxu1 %v535_v39  ;;  %v1535_v12 = vsel %vm769_vm4, 1.0, %v1650_v5  ;;  %v839_v39 = vld [vmem:[%s2315_s5 + $0xb0] sm:$0xff] }
  0x47   : > { %649 = vmatpush.msrb.mxu0 %v450_v18  ;;  %695 = vmatpush.msrb.mxu2 %v452_v19  ;;  %v861_v18 = vld [vmem:[%s2315_s5 + $0x160] sm:$0xff]  ;;  %v856_v19 = vld [vmem:[%s2315_s5 + $0x138] sm:$0xff] }
  0x48   : > { %661 = vmatpush.msrb.mxu1 %v528_v41  ;;  %v835_v41 = vld [vmem:[%s2315_s5 + $0x90] sm:$0xff] }
  0x49   : > { %650 = vmatpush.msrb.mxu0 %v443_v22  ;;  %696 = vmatpush.msrb.mxu2 %v445_v23  ;;  %v853_v22 = vld [vmem:[%s2315_s5 + $0x120] sm:$0xff]  ;;  %v854_v23 = vld [vmem:[%s2315_s5 + $0x128] sm:$0xff] }
  0x4a   : > { %662 = vmatpush.msrb.mxu1 %v521_v43  ;;  %632 = vmatmul.f32.gmra.mxu3 %v1741_v49  ;;  %v837_v43 = vld [vmem:[%s2315_s5 + $0xa0] sm:$0xff] }
  0x4b   : > { %651 = vmatpush.msrb.mxu0 %v436_v26  ;;  %697 = vmatpush.msrb.mxu2 %v438_v27  ;;  %v851_v26 = vld [vmem:[%s2315_s5 + $0x110] sm:$0xff]  ;;  %v852_v27 = vld [vmem:[%s2315_s5 + $0x118] sm:$0xff] }
  0x4c   : > { %652 = vmatmul.f32.vlgmr.msrb.gmra.mxu0 %v1737_v37  ;;  %698 = vmatmul.f32.vlgmr.msrb.gmra.mxu2 %v1737_v37 }
  0x4d   : > { %663 = vmatpush.msrb.mxu1 %v514_v45  ;;  %865 = vmatpush.msra.mxu0 %v862_v13  ;;  %v833_v45 = vld [vmem:[%s2315_s5 + $0x80] sm:$0xff] }
  0x4e   : > { %586 = vmatmul.f32.gmra.mxu1 %v1741_v49  ;;  %911 = vmatpush.msra.mxu2 %v864_v15  ;;  %v1601_v15 = vld [vmem:[%s2314_s4] ss:$0 sm:$0xff] }
  0x4f   : > { %664 = vmatpush.msrb.mxu1 %v507_v46  ;;  %866 = vmatpush.msra.mxu0 %v859_v16 }
  0x50   : > { %912 = vmatpush.msra.mxu2 %v861_v18 }
  0x51   : > { %665 = vmatpush.msrb.mxu1 %v500_v47  ;;  %867 = vmatpush.msra.mxu0 %v856_v19  ;;  %v834_v47 = vld [vmem:[%s2315_s5 + $0x88] sm:$0xff] }
  0x52   : > { %913 = vmatpush.msra.mxu2 %v858_v21 }
  0x53   : > { %666 = vmatpush.msrb.mxu1 %v493_v48  ;;  %868 = vmatpush.msra.mxu0 %v853_v22  ;;  %v829_v48 = vld [vmem:[%s2315_s5 + $0x60] sm:$0xff] }
  0x54   : > { %655 = vmatmul.f32.gmra.mxu0 %v1741_v49  ;;  %701 = vmatmul.f32.gmra.mxu2 %v1741_v49 }
  0x55   : > { %667 = vmatpush.msrb.mxu1 %v486_v50  ;;  %914 = vmatpush.msra.mxu2 %v855_v24  ;;  %v830_v50 = vld [vmem:[%s2315_s5 + $0x68] sm:$0xff] }
  0x56   : > { %869 = vmatpush.msra.mxu0 %v850_v25 }
  0x57   : > { %668 = vmatpush.msrb.mxu1 %v479_v51  ;;  %915 = vmatpush.msra.mxu2 %v852_v27  ;;  %v831_v51 = vld [vmem:[%s2315_s5 + $0x70] sm:$0xff] }
  0x58   : > { %870 = vmatpush.msra.mxu0 %v847_v28 }
  0x59   : > { %669 = vmatpush.msrb.mxu1 %v472_v52  ;;  %916 = vmatpush.msra.mxu2 %v849_v30  ;;  %v826_v52 = vld [vmem:[%s2315_s5 + $0x48] sm:$0xff] }
  0x5a   : > { %871 = vmatpush.msra.mxu0 %v844_v31  ;;  %v1067_v31 = vld [vmem:[%s2317_s7 + $0x168] sm:$0xff] }
  0x5b   : > { %670 = vmatpush.msrb.mxu1 %v465_v53  ;;  %917 = vmatpush.msra.mxu2 %v846_v33  ;;  %v827_v53 = vld [vmem:[%s2315_s5 + $0x50] sm:$0xff] }
  0x5c   : > { %872 = vmatpush.msra.mxu0 %v841_v34  ;;  %v1064_v33 = vld [vmem:[%s2317_s7 + $0x150] sm:$0xff]  ;;  %v1065_v34 = vld [vmem:[%s2317_s7 + $0x158] sm:$0xff] }
  0x5d   : > { %671 = vmatpush.msrb.mxu1 %v458_v54  ;;  %918 = vmatpush.msra.mxu2 %v843_v36  ;;  %v828_v54 = vld [vmem:[%s2315_s5 + $0x58] sm:$0xff] }
  0x5e   : > { %873 = vmatpush.msra.mxu0 %v838_v38  ;;  %v1061_v36 = vld [vmem:[%s2317_s7 + $0x138] sm:$0xff] }
  0x5f   : > { %672 = vmatpush.msrb.mxu1 %v451_v56  ;;  %919 = vmatpush.msra.mxu2 %v840_v40  ;;  %v823_v56 = vld [vmem:[%s2315_s5 + $0x30] sm:$0xff]  ;;  %v1063_v40 = vld [vmem:[%s2317_s7 + $0x148] sm:$0xff] }
  0x60   : > { %874 = vmatpush.msra.mxu0 %v835_v41 }
  0x61   : > { %673 = vmatpush.msrb.mxu1 %v444_v57  ;;  %920 = vmatpush.msra.mxu2 %v837_v43  ;;  %v824_v57 = vld [vmem:[%s2315_s5 + $0x38] sm:$0xff]  ;;  %v1539_v43 = vadd.s32 4294967291, %v1770_v4 }
  0x62   : > { %875 = vmatpush.msra.mxu0 %v832_v44 }
  0x63   : > { %674 = vmatpush.msrb.mxu1 %v437_v58  ;;  %921 = vmatpush.msra.mxu2 %v834_v47  ;;  %v825_v58 = vld [vmem:[%s2315_s5 + $0x40] sm:$0xff]  ;;  %vm937_vm6 = vcmp.eq.s32.totalorder %v1765_v1, %v1539_v43  ;;  %v1544_v47 = vadd.s32 5, %v1763_v63 }
  0x64   : > { %675 = vmatmul.f32.vlgmr.msrb.gmra.mxu1 %v1737_v37  ;;  %876 = vmatpush.msra.mxu0 %v829_v48 }
  0x65   : > { %888 = vmatpush.msra.mxu1 %v863_v14  ;;  %922 = vmatpush.msra.mxu2 %v831_v51  ;;  %vm973_vm7 = vcmp.eq.s32.totalorder %v1765_v1, %v1544_v47 }
  0x66   : > { %877 = vmatpush.msra.mxu0 %v826_v52  ;;  %v1546_v48 = vsel %vm973_vm7, 1.0, %v1650_v5  ;;  %v1058_v52 = vld [vmem:[%s2317_s7 + $0x120] sm:$0xff] }
  0x67   : > { %889 = vmatpush.msra.mxu1 %v860_v17  ;;  %923 = vmatpush.msra.mxu2 %v828_v54  ;;  %v1060_v54 = vld [vmem:[%s2317_s7 + $0x130] sm:$0xff] }
  0x68   : > { %878 = vmatpush.msra.mxu0 %v823_v56  ;;  %v1055_v56 = vld [vmem:[%s2317_s7 + $0x108] sm:$0xff] }
  0x69   : > { %890 = vmatpush.msra.mxu1 %v857_v20  ;;  %924 = vmatpush.msra.mxu2 %v825_v58  ;;  %v1057_v58 = vld [vmem:[%s2317_s7 + $0x118] sm:$0xff] }
  0x6a   : > { %879 = vmatpush.msra.mxu0 %v820_v61  ;;  %v1052_v61 = vld [vmem:[%s2317_s7 + $0xf0] sm:$0xff] }
  0x6b   : > { %891 = vmatpush.msra.mxu1 %v854_v23  ;;  %925 = vmatpush.msra.mxu2 %v822_v2  ;;  %v1054_v2 = vld [vmem:[%s2317_s7 + $0x100] sm:$0xff] }
  0x6c   : > { %678 = vmatmul.f32.gmra.mxu1 %v1741_v49  ;;  %v1528_v49 = vsel %vm730_vm0, 1.0, %v1650_v5 }
  0x6d   : > { %892 = vmatpush.msra.mxu1 %v851_v26 }
  0x6f   : > { %893 = vmatpush.msra.mxu1 %v848_v29 }
  0x71   : > { %894 = vmatpush.msra.mxu1 %v845_v32  ;;  %v1068_v32 = vld [vmem:[%s2317_s7 + $0x170] sm:$0xff] }
  0x73   : > { %895 = vmatpush.msra.mxu1 %v842_v35  ;;  %v1066_v35 = vld [vmem:[%s2317_s7 + $0x160] sm:$0xff] }
  0x75   : > { %896 = vmatpush.msra.mxu1 %v839_v39  ;;  %v1062_v39 = vld [vmem:[%s2317_s7 + $0x140] sm:$0xff] }
  0x77   : > { %897 = vmatpush.msra.mxu1 %v836_v42 }
  0x79   : > { %898 = vmatpush.msra.mxu1 %v833_v45  ;;  %v1541_v45 = vsel %vm937_vm6, 1.0, %v1650_v5 }
  0x7b   : > { %899 = vmatpush.msra.mxu1 %v830_v50  ;;  %v1545_v50 = vadd.s32 5, %v1770_v4 }
  0x7d   : > { %900 = vmatpush.msra.mxu1 %v827_v53  ;;  %vm974_vm8 = vcmp.eq.s32.totalorder %v1765_v1, %v1545_v50  ;;  %v1059_v53 = vld [vmem:[%s2317_s7 + $0x128] sm:$0xff] }
  0x7e   : > { %v1547_v51 = vsel %vm974_vm8, 1.0, %v1650_v5 }
  0x7f   : > { %901 = vmatpush.msra.mxu1 %v824_v57  ;;  %v1056_v57 = vld [vmem:[%s2317_s7 + $0x110] sm:$0xff] }
  0xa9   : > { %v1753_v55 = vpop.f32.mrf.mxu0 }
  0xaf   : > { %v1755_v59 = vpop.f32.mrf.mxu2 }
  0xb1   : > { %v1758_v60 = vpop.f32.mrf.mxu0 }
  0xb7   : > { %v1761_v62 = vpop.f32.mrf.mxu2 }
  0xc5   : > { %v1882_v46 = vpop.f32.mrf.mxu3 }
  0xc9   : > { %v653_v0 = vpop.f32.mrf.mxu0 }
  0xcf   : > { %v699_v3 = vpop.f32.mrf.mxu2 }
  0xd1   : > { %v656_v37 = vpop.f32.mrf.mxu0 }
  0xd2   : > { %757 = vmatpush.msrb.mxu3 %v656_v37  ;;  %v1925_v37 = vpop.f32.mrf.mxu3 }
  0xd4   : > { %758 = vmatpush.msrb.mxu3 %v653_v0  ;;  %v821_v0 = vld [vmem:[%s2315_s5 + $0x20] sm:$0xff] }
  0xd5   : > { %1530 = vmatmul.msk.f32.vlgmr.msrb.gmra.mxu3 %vm736_vm1, %v1528_v49  ;;  %902 = vmatpush.msra.mxu1 %v821_v0  ;;  %v817_v49 = vld [vmem:[%s2315_s5] sm:$0xff]  ;;  %v1053_v0 = vld [vmem:[%s2317_s7 + $0xf8] sm:$0xff] }
  0xd6   : > { %880 = vmatpush.msra.mxu0 %v817_v49  ;;  %v1049_v49 = vld [vmem:[%s2317_s7 + $0xd8] sm:$0xff] }
  0xd7   : > { %v702_v7 = vpop.f32.mrf.mxu2  ;;  %903 = vmatpush.msra.mxu1 %v818_v6  ;;  %v1050_v6 = vld [vmem:[%s2317_s7 + $0xe0] sm:$0xff] }
  0xd8   : > { %794 = vmatpush.msra.mxu3 %v702_v7  ;;  %v819_v7 = vld [vmem:[%s2315_s5 + $0x10] sm:$0xff]  ;;  %1070 = vmatpush.msrb.mxu0 %v1067_v31  ;;  %v1026_v31 = vld [vmem:[%s2317_s7 + $0x20] sm:$0xff] }
  0xd9   : > { %926 = vmatpush.msra.mxu2 %v819_v7  ;;  %1093 = vmatpush.msrb.mxu1 %v1068_v32  ;;  %v1051_v7 = vld [vmem:[%s2317_s7 + $0xe8] sm:$0xff] }
  0xda   : > { %795 = vmatpush.msra.mxu3 %v699_v3  ;;  %v1923_v3 = vpop.f32.mrf.mxu1  ;;  %1071 = vmatpush.msrb.mxu0 %v1064_v33  ;;  %v1027_v32 = vld [vmem:[%s2317_s7 + $0x28] sm:$0xff] }
  0xdb   : > { %1094 = vmatpush.msrb.mxu1 %v1065_v34  ;;  %v1023_v33 = vld [vmem:[%s2317_s7 + $0x8] sm:$0xff]  ;;  %v1024_v34 = vld [vmem:[%s2317_s7 + $0x10] sm:$0xff] }
  0xdc   : > { %1072 = vmatpush.msrb.mxu0 %v1061_v36 }
  0xdd   : > { %1531 = vmatmul.msk.f32.gmra.mxu3 %vm736_vm1, %v1529_v8  ;;  %1095 = vmatpush.msrb.mxu1 %v1062_v39 }
  0xde   : > { %1073 = vmatpush.msrb.mxu0 %v1058_v52 }
  0xdf   : > { %1096 = vmatpush.msrb.mxu1 %v1059_v53 }
  0xe0   : > { %1074 = vmatpush.msrb.mxu0 %v1055_v56 }
  0xe1   : > { %1097 = vmatpush.msrb.mxu1 %v1056_v57 }
  0xe2   : > { %v1936_v8 = vpop.f32.mrf.mxu1  ;;  %1075 = vmatpush.msrb.mxu0 %v1052_v61 }
  0xe3   : > { %1098 = vmatpush.msrb.mxu1 %v1053_v0  ;;  %v1272_v0 = vld [vmem:[%s2319_s9 + $0x168] sm:$0xff] }
  0xe4   : > { %1076 = vmatpush.msrb.mxu0 %v1049_v49  ;;  %v1269_v49 = vld [vmem:[%s2319_s9 + $0x150] sm:$0xff] }
  0xe5   : > { %1536 = vmatmul.msk.f32.vlgmr.msra.gmra.mxu3 %vm736_vm1, %v1534_v10  ;;  %1099 = vmatpush.msrb.mxu1 %v1050_v6  ;;  %v1270_v6 = vld [vmem:[%s2319_s9 + $0x158] sm:$0xff] }
  0xea   : > { %v676_v11 = vpop.f32.mrf.mxu1 }
  0xed   : > { %1537 = vmatmul.msk.f32.gmra.mxu3 %vm736_vm1, %v1535_v12  ;;  %v1941_v12 = vld [vmem:[%s2313_s3] sm:$0xf] }
  0xee   : > { %v707_v13 = vperm.slane %v1941_v12, 0  ;;  %v708_v39 = vperm.slane %v1941_v12, 1 }
  0xf0   : > { %v715_v18 = vadd.f32 %v707_v13, %v1753_v55  ;;  %v719_v26 = vadd.f32 %v707_v13, %v1758_v60  ;;  %v1538_v55 = vadd.s32 4294967291, %v1763_v63  ;;  %v1069_v60 = vld [vmem:[%s2317_s7 + $0x178] sm:$0xff]  ;;  %v1043_v13 = vld [vmem:[%s2317_s7 + $0xa8] sm:$0xff] }
  0xf1   : > { %1116 = vmatpush.msrb.mxu2 %v1069_v60  ;;  %v1022_v60 = vld [vmem:[%s2317_s7] sm:$0xff] }
  0xf2   : > { %v679_v20 = vpop.f32.mrf.mxu1  ;;  %vm936_vm5 = vcmp.eq.s32.totalorder %v1765_v1, %v1538_v55  ;;  %v1025_v55 = vld [vmem:[%s2317_s7 + $0x18] sm:$0xff] }
  0xf3   : > { %1117 = vmatpush.msrb.mxu2 %v1066_v35  ;;  %v1540_v42 = vsel %vm936_vm5, 1.0, %v1650_v5 }
  0xf5   : > { %1118 = vmatpush.msrb.mxu2 %v1063_v40 }
  0xf7   : > { %1119 = vmatpush.msrb.mxu2 %v1060_v54  ;;  %v720_v54 = vadd.f32 %v708_v39, %v1936_v8  ;;  %v1274_v8 = vld [vmem:[%s2319_s9 + $0x178] sm:$0xff] }
  0xf9   : > { %1120 = vmatpush.msrb.mxu2 %v1057_v58 }
  0xfb   : > { %1121 = vmatpush.msrb.mxu2 %v1054_v2  ;;  %v1273_v2 = vld [vmem:[%s2319_s9 + $0x170] sm:$0xff] }
  0xfd   : > { %1122 = vmatpush.msrb.mxu2 %v1051_v7  ;;  %v1271_v7 = vld [vmem:[%s2319_s9 + $0x160] sm:$0xff] }
 0x158   : > { %v760_v9 = vpop.f32.mrf.mxu3 }
 0x159   : > { %v803_v14 = vadd.f32 %v760_v9, %v676_v11  ;;  %v1046_v9 = vld [vmem:[%s2317_s7 + $0xc0] sm:$0xff]  ;;  %v1048_v11 = vld [vmem:[%s2317_s7 + $0xd0] sm:$0xff] }
 0x15a   : > { %1077 = vmatpush.msrb.mxu0 %v1046_v9  ;;  %1123 = vmatpush.msrb.mxu2 %v1048_v11  ;;  %v1266_v9 = vld [vmem:[%s2319_s9 + $0x138] sm:$0xff]  ;;  %v1267_v11 = vld [vmem:[%s2319_s9 + $0x140] sm:$0xff] }
 0x15c   : > { %1078 = vmatpush.msrb.mxu0 %v1043_v13  ;;  %v1268_v13 = vld [vmem:[%s2319_s9 + $0x148] sm:$0xff] }
 0x160   : > { %v763_v10 = vpop.f32.mrf.mxu3 }
 0x161   : > { %v804_v22 = vadd.f32 %v763_v10, %v679_v20  ;;  %v1047_v10 = vld [vmem:[%s2317_s7 + $0xc8] sm:$0xff]  ;;  %v1038_v20 = vld [vmem:[%s2317_s7 + $0x80] sm:$0xff] }
 0x162   : > { %1100 = vmatpush.msrb.mxu1 %v1047_v10 }
 0x168   : > { %v797_v16 = vpop.f32.mrf.mxu3 }
 0x169   : > { %v805_v17 = vadd.f32 %v803_v14, %v797_v16  ;;  %v1044_v14 = vld [vmem:[%s2317_s7 + $0xb0] sm:$0xff] }
 0x16a   : > { %v1040_v16 = vld [vmem:[%s2317_s7 + $0x90] sm:$0xff]  ;;  %1101 = vmatpush.msrb.mxu1 %v1044_v14 }
 0x16b   : > { %v811_v19 = vadd.f32 %v1601_v15, %v805_v17  ;;  %v1041_v17 = vld [vmem:[%s2317_s7 + $0x98] sm:$0xff]  ;;  %1079 = vmatpush.msrb.mxu0 %v1040_v16  ;;  %v1551_v16 = vadd.s32 4294967293, %v1770_v4 }
 0x16c   : > { %1102 = vmatpush.msrb.mxu1 %v1041_v17 }
 0x16d   : > { %v813_v21 = vadd.f32 %v811_v19, %v715_v18  ;;  %v1042_v18 = vld [vmem:[%s2317_s7 + $0xa0] sm:$0xff]  ;;  %v1037_v19 = vld [vmem:[%s2317_s7 + $0x78] sm:$0xff]  ;;  %vm1142_vm10 = vcmp.eq.s32.totalorder %v1765_v1, %v1551_v16 }
 0x16e   : > { %1080 = vmatpush.msrb.mxu0 %v1037_v19  ;;  %1103 = vmatpush.msrb.mxu1 %v1038_v20  ;;  %v1556_v19 = vadd.s32 3, %v1763_v63 }
 0x16f   : > { %v815_v23 = vmax.f32 %v813_v21, 0.0  ;;  %v1039_v21 = vld [vmem:[%s2317_s7 + $0x88] sm:$0xff] }
 0x170   : > { %v800_v24 = vpop.f32.mrf.mxu3  ;;  %vm1178_vm11 = vcmp.eq.s32.totalorder %v1765_v1, %v1556_v19 }
 0x171   : > { %v806_v25 = vadd.f32 %v804_v22, %v800_v24  ;;  %881 = vmatmul.f32.vlgmr.msra.gmra.mxu0 %v815_v23  ;;  %904 = vmatmul.f32.vlgmr.msra.gmra.mxu1 %v815_v23  ;;  %v1034_v22 = vld [vmem:[%s2317_s7 + $0x60] sm:$0xff]  ;;  %v1036_v24 = vld [vmem:[%s2317_s7 + $0x70] sm:$0xff]  ;;  %v1558_v20 = vsel %vm1178_vm11, 1.0, %v1650_v5 }
 0x172   : > { %927 = vmatmul.f32.vlgmr.msra.gmra.mxu2 %v815_v23  ;;  %v1035_v23 = vld [vmem:[%s2317_s7 + $0x68] sm:$0xff]  ;;  %1081 = vmatpush.msrb.mxu0 %v1034_v22 }
 0x173   : > { %v812_v27 = vadd.f32 %v1601_v15, %v806_v25  ;;  %v1045_v15 = vld [vmem:[%s2317_s7 + $0xb8] sm:$0xff]  ;;  %1104 = vmatpush.msrb.mxu1 %v1035_v23  ;;  %v1031_v25 = vld [vmem:[%s2317_s7 + $0x48] sm:$0xff]  ;;  %v1263_v23 = vld [vmem:[%s2319_s9 + $0x120] sm:$0xff] }
 0x174   : > { %1124 = vmatpush.msrb.mxu2 %v1045_v15  ;;  %1082 = vmatpush.msrb.mxu0 %v1031_v25  ;;  %v1265_v25 = vld [vmem:[%s2319_s9 + $0x130] sm:$0xff] }
 0x175   : > { %v814_v28 = vadd.f32 %v812_v27, %v719_v26  ;;  %v1032_v26 = vld [vmem:[%s2317_s7 + $0x50] sm:$0xff]  ;;  %v1033_v27 = vld [vmem:[%s2317_s7 + $0x58] sm:$0xff] }
 0x176   : > { %1125 = vmatpush.msrb.mxu2 %v1042_v18  ;;  %1105 = vmatpush.msrb.mxu1 %v1032_v26  ;;  %v1553_v18 = vsel %vm1142_vm10, 1.0, %v1650_v5  ;;  %v1260_v26 = vld [vmem:[%s2319_s9 + $0x108] sm:$0xff] }
 0x177   : > { %v816_v29 = vmax.f32 %v814_v28, 0.0  ;;  %v1028_v28 = vld [vmem:[%s2317_s7 + $0x30] sm:$0xff] }
 0x178   : > { %1126 = vmatpush.msrb.mxu2 %v1039_v21  ;;  %1083 = vmatpush.msrb.mxu0 %v1028_v28  ;;  %v1557_v21 = vadd.s32 3, %v1770_v4  ;;  %v1262_v28 = vld [vmem:[%s2319_s9 + $0x118] sm:$0xff] }
 0x179   : > { %884 = vmatmul.f32.gmra.mxu0 %v816_v29  ;;  %907 = vmatmul.f32.gmra.mxu1 %v816_v29 }
 0x17a   : > { %930 = vmatmul.f32.gmra.mxu2 %v816_v29  ;;  %v1029_v29 = vld [vmem:[%s2317_s7 + $0x38] sm:$0xff]  ;;  %1084 = vmatpush.msrb.mxu0 %v1025_v55  ;;  %vm1179_vm12 = vcmp.eq.s32.totalorder %v1765_v1, %v1557_v21  ;;  %v1259_v55 = vld [vmem:[%s2319_s9 + $0x100] sm:$0xff] }
 0x17b   : > { %1127 = vmatpush.msrb.mxu2 %v1036_v24  ;;  %1106 = vmatpush.msrb.mxu1 %v1029_v29  ;;  %v1559_v22 = vsel %vm1179_vm12, 1.0, %v1650_v5  ;;  %v1264_v24 = vld [vmem:[%s2319_s9 + $0x128] sm:$0xff]  ;;  %v1257_v29 = vld [vmem:[%s2319_s9 + $0xf0] sm:$0xff] }
 0x17c   : > { %1085 = vmatpush.msrb.mxu0 %v1022_v60  ;;  %v1256_v60 = vld [vmem:[%s2319_s9 + $0xe8] sm:$0xff] }
 0x17d   : > { %1128 = vmatpush.msrb.mxu2 %v1033_v27  ;;  %1107 = vmatpush.msrb.mxu1 %v1026_v31  ;;  %v1261_v27 = vld [vmem:[%s2319_s9 + $0x110] sm:$0xff]  ;;  %v1254_v31 = vld [vmem:[%s2319_s9 + $0xd8] sm:$0xff] }
 0x17e   : > { %1275 = vmatpush.msra.mxu0 %v1272_v0  ;;  %v1227_v0 = vld [vmem:[%s2319_s9] sm:$0xff] }
 0x17f   : > { %1108 = vmatpush.msrb.mxu1 %v1023_v33  ;;  %v1251_v33 = vld [vmem:[%s2319_s9 + $0xc0] sm:$0xff] }
 0x180   : > { %1276 = vmatpush.msra.mxu0 %v1269_v49 }
 0x181   : > { %1298 = vmatpush.msra.mxu1 %v1273_v2  ;;  %v1228_v2 = vld [vmem:[%s2319_s9 + $0x8] sm:$0xff] }
 0x182   : > { %1277 = vmatpush.msra.mxu0 %v1266_v9  ;;  %v709_v9 = vperm.slane %v1941_v12, 2 }
 0x183   : > { %1299 = vmatpush.msra.mxu1 %v1270_v6 }
 0x184   : > { %1278 = vmatpush.msra.mxu0 %v1263_v23  ;;  %v721_v23 = vadd.f32 %v709_v9, %v1761_v62 }
 0x185   : > { %1300 = vmatpush.msra.mxu1 %v1267_v11  ;;  %v1603_v11 = vld [vmem:[%s2318_s8] ss:$0 sm:$0xff] }
 0x186   : > { %1279 = vmatpush.msra.mxu0 %v1260_v26 }
 0x187   : > { %1301 = vmatpush.msra.mxu1 %v1264_v24 }
 0x188   : > { %1280 = vmatpush.msra.mxu0 %v1257_v29 }
 0x189   : > { %1302 = vmatpush.msra.mxu1 %v1261_v27 }
 0x18a   : > { %1281 = vmatpush.msra.mxu0 %v1254_v31 }
 0x18c   : > { %1282 = vmatpush.msra.mxu0 %v1251_v33  ;;  %v1569_v33 = vadd.s32 1, %v1770_v4 }
 0x18e   : > { %vm1384_vm0 = vcmp.eq.s32.totalorder %v1765_v1, %v1569_v33 }
 0x1ee   : > { %v882_v30 = vpop.f32.mrf.mxu0 }
 0x1f5   : > { %v928_v38 = vpop.f32.mrf.mxu2 }
 0x1f6   : > { %v885_v41 = vpop.f32.mrf.mxu0 }
 0x1f7   : > { %962 = vmatpush.msrb.mxu3 %v885_v41  ;;  %v1602_v41 = vld [vmem:[%s2316_s6] ss:$0 sm:$0xff] }
 0x1f9   : > { %963 = vmatpush.msrb.mxu3 %v882_v30  ;;  %v1030_v30 = vld [vmem:[%s2317_s7 + $0x40] sm:$0xff] }
 0x1fa   : > { %1542 = vmatmul.msk.f32.vlgmr.msrb.gmra.mxu3 %vm736_vm1, %v1540_v42  ;;  %1129 = vmatpush.msrb.mxu2 %v1030_v30  ;;  %v1258_v30 = vld [vmem:[%s2319_s9 + $0xf8] sm:$0xff] }
 0x1fb   : > { %1303 = vmatpush.msra.mxu1 %v1258_v30 }
 0x1fc   : > { %1130 = vmatpush.msrb.mxu2 %v1027_v32  ;;  %v1255_v32 = vld [vmem:[%s2319_s9 + $0xe0] sm:$0xff] }
 0x1fd   : > { %v931_v44 = vpop.f32.mrf.mxu2  ;;  %1304 = vmatpush.msra.mxu1 %v1255_v32  ;;  %v1568_v32 = vadd.s32 1, %v1763_v63 }
 0x1fe   : > { %999 = vmatpush.msra.mxu3 %v931_v44  ;;  %1131 = vmatpush.msrb.mxu2 %v1024_v34  ;;  %v716_v44 = vadd.f32 %v708_v39, %v1923_v3  ;;  %v1550_v3 = vadd.s32 4294967293, %v1763_v63  ;;  %v1252_v34 = vld [vmem:[%s2319_s9 + $0xc8] sm:$0xff]  ;;  %v1250_v39 = vld [vmem:[%s2319_s9 + $0xb8] sm:$0xff] }
 0x1ff   : > { %1305 = vmatpush.msra.mxu1 %v1252_v34  ;;  %vm1383_vm15 = vcmp.eq.s32.totalorder %v1765_v1, %v1568_v32  ;;  %v1571_v34 = vsel %vm1384_vm0, 1.0, %v1650_v5 }
 0x200   : > { %1000 = vmatpush.msra.mxu3 %v928_v38  ;;  %v905_v38 = vpop.f32.mrf.mxu1  ;;  %vm1141_vm9 = vcmp.eq.s32.totalorder %v1765_v1, %v1550_v3  ;;  %1321 = vmatpush.msra.mxu2 %v1274_v8  ;;  %v1232_v3 = vld [vmem:[%s2319_s9 + $0x28] sm:$0xff]  ;;  %v1229_v8 = vld [vmem:[%s2319_s9 + $0x10] sm:$0xff] }
 0x201   : > { %v1552_v15 = vsel %vm1141_vm9, 1.0, %v1650_v5 }
 0x202   : > { %1543 = vmatmul.msk.f32.gmra.mxu3 %vm736_vm1, %v1541_v45  ;;  %1322 = vmatpush.msra.mxu2 %v1271_v7 }
 0x204   : > { %1323 = vmatpush.msra.mxu2 %v1268_v13 }
 0x206   : > { %1324 = vmatpush.msra.mxu2 %v1265_v25 }
 0x208   : > { %1325 = vmatpush.msra.mxu2 %v1262_v28 }
 0x20a   : > { %1548 = vmatmul.msk.f32.vlgmr.msra.gmra.mxu3 %vm736_vm1, %v1546_v48  ;;  %v908_v48 = vpop.f32.mrf.mxu1  ;;  %1326 = vmatpush.msra.mxu2 %v1259_v55  ;;  %v1563_v55 = vadd.s32 4294967295, %v1770_v4 }
 0x20c   : > { %1327 = vmatpush.msra.mxu2 %v1256_v60  ;;  %vm1347_vm14 = vcmp.eq.s32.totalorder %v1765_v1, %v1563_v55  ;;  %v1570_v60 = vsel %vm1383_vm15, 1.0, %v1650_v5 }
 0x20d   : > { %v1565_v31 = vsel %vm1347_vm14, 1.0, %v1650_v5 }
 0x212   : > { %1549 = vmatmul.msk.f32.gmra.mxu3 %vm736_vm1, %v1547_v51 }
 0x27d   : > { %v965_v35 = vpop.f32.mrf.mxu3 }
 0x27e   : > { %v1008_v40 = vadd.f32 %v965_v35, %v905_v38  ;;  %v1253_v35 = vld [vmem:[%s2319_s9 + $0xd0] sm:$0xff] }
 0x27f   : > { %v1249_v38 = vld [vmem:[%s2319_s9 + $0xb0] sm:$0xff]  ;;  %1328 = vmatpush.msra.mxu2 %v1253_v35 }
 0x280   : > { %1306 = vmatpush.msra.mxu1 %v1249_v38  ;;  %v710_v38 = vperm.slane %v1941_v12, 3 }
 0x281   : > { %1329 = vmatpush.msra.mxu2 %v1250_v39 }
 0x285   : > { %v968_v36 = vpop.f32.mrf.mxu3 }
 0x286   : > { %v1009_v50 = vadd.f32 %v968_v36, %v908_v48  ;;  %v1248_v36 = vld [vmem:[%s2319_s9 + $0xa8] sm:$0xff] }
 0x287   : > { %1283 = vmatpush.msra.mxu0 %v1248_v36  ;;  %v1240_v48 = vld [vmem:[%s2319_s9 + $0x68] sm:$0xff] }
 0x28d   : > { %v1002_v42 = vpop.f32.mrf.mxu3 }
 0x28e   : > { %v1010_v43 = vadd.f32 %v1008_v40, %v1002_v42  ;;  %v1245_v40 = vld [vmem:[%s2319_s9 + $0x90] sm:$0xff]  ;;  %v1247_v42 = vld [vmem:[%s2319_s9 + $0xa0] sm:$0xff] }
 0x28f   : > { %1284 = vmatpush.msra.mxu0 %v1245_v40  ;;  %1330 = vmatpush.msra.mxu2 %v1247_v42  ;;  %v1604_v40 = vld [vmem:[%s2320_s10] ss:$0 sm:$0xff]  ;;  %v718_v42 = vadd.f32 %v710_v38, %v1882_v46 }
 0x290   : > { %v1016_v45 = vadd.f32 %v1602_v41, %v1010_v43  ;;  %v1242_v43 = vld [vmem:[%s2319_s9 + $0x78] sm:$0xff] }
 0x291   : > { %1285 = vmatpush.msra.mxu0 %v1242_v43 }
 0x292   : > { %v1018_v47 = vadd.f32 %v1016_v45, %v716_v44  ;;  %v1243_v44 = vld [vmem:[%s2319_s9 + $0x80] sm:$0xff]  ;;  %v1244_v45 = vld [vmem:[%s2319_s9 + $0x88] sm:$0xff] }
 0x293   : > { %1331 = vmatpush.msra.mxu2 %v1244_v45 }
 0x294   : > { %v1020_v51 = vmax.f32 %v1018_v47, 0.0  ;;  %v1239_v47 = vld [vmem:[%s2319_s9 + $0x60] sm:$0xff] }
 0x295   : > { %v1005_v52 = vpop.f32.mrf.mxu3  ;;  %1286 = vmatpush.msra.mxu0 %v1239_v47 }
 0x296   : > { %v1011_v53 = vadd.f32 %v1009_v50, %v1005_v52  ;;  %1086 = vmatmul.f32.vlgmr.msrb.gmra.mxu0 %v1020_v51  ;;  %1109 = vmatmul.f32.vlgmr.msrb.gmra.mxu1 %v1020_v51  ;;  %v1241_v50 = vld [vmem:[%s2319_s9 + $0x70] sm:$0xff] }
 0x297   : > { %1132 = vmatmul.f32.vlgmr.msrb.gmra.mxu2 %v1020_v51  ;;  %v1236_v51 = vld [vmem:[%s2319_s9 + $0x48] sm:$0xff]  ;;  %v1237_v52 = vld [vmem:[%s2319_s9 + $0x50] sm:$0xff] }
 0x298   : > { %v1017_v56 = vadd.f32 %v1602_v41, %v1011_v53  ;;  %v1246_v41 = vld [vmem:[%s2319_s9 + $0x98] sm:$0xff]  ;;  %1332 = vmatpush.msra.mxu2 %v1241_v50  ;;  %1287 = vmatpush.msra.mxu0 %v1236_v51 }
 0x299   : > { %1307 = vmatpush.msra.mxu1 %v1246_v41  ;;  %v1238_v53 = vld [vmem:[%s2319_s9 + $0x58] sm:$0xff] }
 0x29a   : > { %v1019_v57 = vadd.f32 %v1017_v56, %v720_v54  ;;  %1333 = vmatpush.msra.mxu2 %v1238_v53  ;;  %v1233_v54 = vld [vmem:[%s2319_s9 + $0x30] sm:$0xff]  ;;  %v1234_v56 = vld [vmem:[%s2319_s9 + $0x38] sm:$0xff] }
 0x29b   : > { %1308 = vmatpush.msra.mxu1 %v1243_v44  ;;  %1288 = vmatpush.msra.mxu0 %v1233_v54 }
 0x29c   : > { %v1021_v58 = vmax.f32 %v1019_v57, 0.0  ;;  %v1235_v57 = vld [vmem:[%s2319_s9 + $0x40] sm:$0xff] }
 0x29d   : > { %1309 = vmatpush.msra.mxu1 %v1240_v48  ;;  %1334 = vmatpush.msra.mxu2 %v1235_v57  ;;  %v722_v48 = vadd.f32 %v710_v38, %v1925_v37 }
 0x29e   : > { %1089 = vmatmul.f32.gmra.mxu0 %v1021_v58  ;;  %1112 = vmatmul.f32.gmra.mxu1 %v1021_v58 }
 0x29f   : > { %1135 = vmatmul.f32.gmra.mxu2 %v1021_v58  ;;  %1310 = vmatpush.msra.mxu1 %v1237_v52  ;;  %v1230_v58 = vld [vmem:[%s2319_s9 + $0x18] sm:$0xff] }
 0x2a0   : > { %1289 = vmatpush.msra.mxu0 %v1230_v58  ;;  %1335 = vmatpush.msra.mxu2 %v1232_v3 }
 0x2a1   : > { %1311 = vmatpush.msra.mxu1 %v1234_v56 }
 0x2a2   : > { %1290 = vmatpush.msra.mxu0 %v1227_v0  ;;  %1336 = vmatpush.msra.mxu2 %v1229_v8 }
 0x313   : > { %v1087_v61 = vpop.f32.mrf.mxu0  ;;  %v1110_v7 = vpop.f32.mrf.mxu1 }
 0x31a   : > { %v1133_v10 = vpop.f32.mrf.mxu2 }
 0x31b   : > { %v1090_v14 = vpop.f32.mrf.mxu0 }
 0x31c   : > { %1167 = vmatpush.msrb.mxu3 %v1090_v14 }
 0x31e   : > { %1168 = vmatpush.msrb.mxu3 %v1087_v61  ;;  %v1231_v61 = vld [vmem:[%s2319_s9 + $0x20] sm:$0xff] }
 0x31f   : > { %1554 = vmatmul.msk.f32.vlgmr.msrb.gmra.mxu3 %vm736_vm1, %v1552_v15  ;;  %1312 = vmatpush.msra.mxu1 %v1231_v61  ;;  %v717_v15 = vadd.f32 %v709_v9, %v1755_v59  ;;  %v1562_v59 = vadd.s32 4294967295, %v1763_v63 }
 0x321   : > { %1313 = vmatpush.msra.mxu1 %v1228_v2  ;;  %vm1346_vm13 = vcmp.eq.s32.totalorder %v1765_v1, %v1562_v59 }
 0x322   : > { %v1136_v17 = vpop.f32.mrf.mxu2  ;;  %v1564_v30 = vsel %vm1346_vm13, 1.0, %v1650_v5 }
 0x323   : > { %1204 = vmatpush.msra.mxu3 %v1136_v17 }
 0x325   : > { %1205 = vmatpush.msra.mxu3 %v1133_v10 }
 0x327   : > { %1555 = vmatmul.msk.f32.gmra.mxu3 %vm736_vm1, %v1553_v18  ;;  %v1113_v18 = vpop.f32.mrf.mxu1 }
 0x32f   : > { %1560 = vmatmul.msk.f32.vlgmr.msra.gmra.mxu3 %vm736_vm1, %v1558_v20 }
 0x337   : > { %1561 = vmatmul.msk.f32.gmra.mxu3 %vm736_vm1, %v1559_v22 }
 0x3a2   : > { %v1170_v49 = vpop.f32.mrf.mxu3 }
 0x3a3   : > { %v1213_v10 = vadd.f32 %v1170_v49, %v1110_v7 }
 0x3aa   : > { %v1173_v6 = vpop.f32.mrf.mxu3 }
 0x3ab   : > { %v1214_v19 = vadd.f32 %v1173_v6, %v1113_v18 }
 0x3b2   : > { %v1207_v13 = vpop.f32.mrf.mxu3 }
 0x3b3   : > { %v1215_v14 = vadd.f32 %v1213_v10, %v1207_v13 }
 0x3b5   : > { %v1221_v16 = vadd.f32 %v1603_v11, %v1215_v14 }
 0x3b7   : > { %v1223_v17 = vadd.f32 %v1221_v16, %v717_v15 }
 0x3b9   : > { %v1225_v20 = vmax.f32 %v1223_v17, 0.0 }
 0x3ba   : > { %v1210_v21 = vpop.f32.mrf.mxu3 }
 0x3bb   : > { %v1216_v22 = vadd.f32 %v1214_v19, %v1210_v21  ;;  %1291 = vmatmul.f32.vlgmr.msra.gmra.mxu0 %v1225_v20  ;;  %1314 = vmatmul.f32.vlgmr.msra.gmra.mxu1 %v1225_v20 }
 0x3bc   : > { %1337 = vmatmul.f32.vlgmr.msra.gmra.mxu2 %v1225_v20 }
 0x3bd   : > { %v1222_v24 = vadd.f32 %v1603_v11, %v1216_v22 }
 0x3bf   : > { %v1224_v25 = vadd.f32 %v1222_v24, %v721_v23 }
 0x3c1   : > { %v1226_v26 = vmax.f32 %v1224_v25, 0.0 }
 0x3c3   : > { %1294 = vmatmul.f32.gmra.mxu0 %v1226_v26  ;;  %1317 = vmatmul.f32.gmra.mxu1 %v1226_v26 }
 0x3c4   : > { %1340 = vmatmul.f32.gmra.mxu2 %v1226_v26 }
 0x438   : > { %v1292_v27 = vpop.f32.mrf.mxu0  ;;  %v1315_v63 = vpop.f32.mrf.mxu1 }
 0x43f   : > { %v1338_v28 = vpop.f32.mrf.mxu2 }
 0x440   : > { %v1295_v29 = vpop.f32.mrf.mxu0  ;;  %v1318_v44 = vpop.f32.mrf.mxu1 }
 0x441   : > { %1372 = vmatpush.msrb.mxu3 %v1295_v29 }
 0x443   : > { %1373 = vmatpush.msrb.mxu3 %v1292_v27 }
 0x444   : > { %1566 = vmatmul.msk.f32.vlgmr.msrb.gmra.mxu3 %vm736_vm1, %v1564_v30 }
 0x447   : > { %v1341_v62 = vpop.f32.mrf.mxu2 }
 0x448   : > { %1409 = vmatpush.msra.mxu3 %v1341_v62 }
 0x44a   : > { %1410 = vmatpush.msra.mxu3 %v1338_v28 }
 0x44c   : > { %1567 = vmatmul.msk.f32.gmra.mxu3 %vm736_vm1, %v1565_v31 }
 0x454   : > { %1572 = vmatmul.msk.f32.vlgmr.msra.gmra.mxu3 %vm736_vm1, %v1570_v60 }
 0x45c   : > { %1573 = vmatmul.msk.f32.gmra.mxu3 %vm736_vm1, %v1571_v34 }
 0x4c7   : > { %v1375_v35 = vpop.f32.mrf.mxu3 }
 0x4c8   : > { %v1418_v39 = vadd.f32 %v1375_v35, %v1315_v63 }
 0x4cf   : > { %v1378_v36 = vpop.f32.mrf.mxu3 }
 0x4d0   : > { %v1419_v5 = vadd.f32 %v1378_v36, %v1318_v44 }
 0x4d7   : > { %v1412_v4 = vpop.f32.mrf.mxu3 }
 0x4d8   : > { %v1420_v41 = vadd.f32 %v1418_v39, %v1412_v4 }
 0x4da   : > { %v1426_v43 = vadd.f32 %v1604_v40, %v1420_v41 }
 0x4dc   : > { %v1428_v1 = vadd.f32 %v1426_v43, %v718_v42 }
 0x4de   : > { %v1430_v45 = vmax.f32 %v1428_v1, 0.0 }
 0x4df   : > { %v1415_v47 = vpop.f32.mrf.mxu3 }
 0x4e0   : > { %1432 = vst [vmem:[%s423_s27] sm:$0xff] %v1430_v45  ;;  %v1421_v12 = vadd.f32 %v1419_v5, %v1415_v47 }
 0x4e2   : > { %v1427_v50 = vadd.f32 %v1604_v40, %v1421_v12 }
 0x4e4   : > { %v1429_v51 = vadd.f32 %v1427_v50, %v722_v48 }
 0x4e6   : > { %v1431_v52 = vmax.f32 %v1429_v51, 0.0 }
 0x4e8   : > { %1433 = vst [vmem:[%s423_s27 + $0x8] sm:$0xff] %v1431_v52 }
 0x4e9 PF: > { %s22_s17 = sadd.s32 1, %s1645_s17  }
 0x4ea   : > { %p19_p7 = scmp.ge.s32.totalorder %s22_s17, 4  }
 0x4ec   :  { %21 = sbr.rel (!%p19_p7) target bundleno = 1 (0x1), region = 102 }
 0x4f1   :  { %1455 = vsyncpa [#allocation3], 1 }
 0x4f2   :  { %1457 = vsyncpa [#allocation3 + $0x1], 1 }

</bundles_post_ra>
